<compile_context>
chip_gen: v7x
topology: tpu7x:2x2x1
jax: 0.10.0
libtpu: 0.0.40
codegen_flags: <defaults>
</compile_context>

<pallas_src>
import math

import jax
import jax.numpy as jnp
from jax import lax
from jax.experimental import pallas as pl
from jax.experimental.pallas import tpu as pltpu

EPS = 1e-5            # torch.nn.LayerNorm default
NEG_FILL = -1e6       # d2l masked_softmax fill value


# ----------------------------------------------------------------------------- helpers

def _cast(a, dtype):
    return a if dtype is None else a.astype(dtype)


def _layernorm(x, gamma, beta):
    """LayerNorm over the last dim (biased variance, like torch). x: (..., D)."""
    mean = jnp.mean(x, axis=-1, keepdims=True)
    var = jnp.mean((x - mean) ** 2, axis=-1, keepdims=True)
    return (x - mean) * lax.rsqrt(var + EPS) * gamma + beta


def _mat(a, w_t, matmul_dtype=None):
    """a @ w_t with f32 accumulation. w_t is PRE-TRANSPOSED to (Din, Dout), so the
    contraction hits w_t's major dim (no in-kernel weight transpose)."""
    return jnp.dot(_cast(a, matmul_dtype), _cast(w_t, matmul_dtype),
                   preferred_element_type=jnp.float32)


def _mha(xq2d, kv2d, bt, q_len, kv_len, wq_t, wk_t, wv_t, wo_t, bias, num_heads,
         matmul_dtype):
    """Multi-head attention over a (bt, q_len) tile of query tokens.

    xq2d: (bt*q_len, D) queries; kv2d: (bt*kv_len, D) keys/values.
    w*_t: (D, D) pre-transposed weights. bias: additive mask broadcastable to
    (bt, q_len, kv_len) — 0 where valid, NEG_FILL where masked.
    Returns the (bt*q_len, D) f32 attention output (pre residual / LayerNorm).
    """
    d = wq_t.shape[1]
    hd = d // num_heads
    scale = 1.0 / math.sqrt(hd)

    # Fused full-width Q/K/V projections (3 wide MXU matmuls), scale folded into Q once.
    q = _mat(xq2d, wq_t, matmul_dtype) * scale
    k = _mat(kv2d, wk_t, matmul_dtype)
    v = _mat(kv2d, wv_t, matmul_dtype)
    q3 = q.reshape(bt, q_len, d)
    k3 = k.reshape(bt, kv_len, d)
    v3 = v.reshape(bt, kv_len, d)

    heads = []
    for h in range(num_heads):            # static unroll; heads are static lane slices
        sl = slice(h * hd, (h + 1) * hd)  # free once hd is a multiple of 128 (production)
        qh, kh, vh = q3[..., sl], k3[..., sl], v3[..., sl]

        s = jnp.einsum('bqd,bkd->bqk', _cast(qh, matmul_dtype), _cast(kh, matmul_dtype),
                       preferred_element_type=jnp.float32)
        s = s + bias                                   # hoisted additive mask (no select)
        m = jnp.max(s, axis=-1, keepdims=True)
        p = jnp.exp(s - m)
        denom = jnp.sum(p, axis=-1, keepdims=True)
        r = pl.reciprocal(denom, approx=True)          # EUP slot, essentially free
        r = r * (2.0 - denom * r)                      # one Newton step -> ~f32 accuracy
        p = p * r

        heads.append(jnp.einsum('bqk,bkd->bqd', _cast(p, matmul_dtype),
                                _cast(vh, matmul_dtype),
                                preferred_element_type=jnp.float32))

    # One lane concat + ONE full-width (K = D) output-projection matmul.
    ctx = jnp.concatenate(heads, axis=-1).reshape(bt * q_len, d)
    return _mat(ctx, wo_t, matmul_dtype)


def _pick_bt(batch, s, se, d, f, h, itemsize=4, budget_bytes=2 << 20):
    """Largest divisor of `batch` whose per-step resident activations fit the budget,
    while keeping >= 2 grid steps so both v7x TensorCores get work."""
    per_row = itemsize * (8 * s * d + 2 * se * d + s * f + 2 * h * s * max(s, se))
    bt = 1
    for cand in range(1, batch + 1):
        if batch % cand:
            continue
        if batch >= 2 and (batch // cand) < 2:
            continue
        if cand * per_row > budget_bytes:
            continue
        bt = cand
    return bt


def _vmem_limit_bytes():
    """Generation-aware scoped-VMEM limit: headroom for compiler scratch on v7x (64 MiB
    physical), raised toward physical on v5e/v6e (128 MiB). Safe fallback: 48 MiB."""
    try:
        cap = int(pltpu.get_tpu_info().vmem_capacity_bytes)
    except Exception:
        return 48 * 1024 * 1024
    return int(min(max(cap - 16 * 1024 * 1024, 32 * 1024 * 1024), 96 * 1024 * 1024))


# ----------------------------------------------------------------------------- wrapper

def decoder_block(x, state, params, num_heads, *, matmul_dtype=None):
    """Pallas implementation of DecoderBlock.forward (training-mode semantics, dropout=0).

    state = (enc_outputs, enc_valid_lens, cache); cache is None on the first call
    (training path), so key_values = X.
    matmul_dtype: e.g. jnp.bfloat16 for v6e/v7x MXU peak (elementwise math stays f32);
    default None keeps exact f32 matmuls (recommended on v5e and for the 1e-4 check).
    """
    enc_outputs, enc_valid_lens, cache = state
    # TODO(synk): autoregressive-inference path (concatenating the KV cache from
    # state[2][i]) is not implemented in-kernel; only the training / first-call path.
    key_values = x

    B, S, D = x.shape
    Se = enc_outputs.shape[1]
    F = params["wf1"].shape[0]

    bt = _pick_bt(B, S, Se, D, F, num_heads)
    grid = (B // bt,)

    # Additive cross-attention mask bias, built once in the wrapper: lane-dense (Se last
    # dim), replaces a 1-wide valid-lens VMEM tile and the per-head select in-kernel.
    ecols = jnp.arange(Se, dtype=jnp.int32)
    enc_bias = jnp.where(ecols[None, :] < enc_valid_lens.astype(jnp.int32)[:, None],
                         0.0, NEG_FILL).astype(jnp.float32).reshape(B, 1, Se)

    # Pre-transpose all weights to (Din, Dout) ONCE outside the kernel (free XLA op),
    # so in-kernel matmuls never contract the rhs minor (lane) dim.
    def t(name):
        return jnp.transpose(params[name])

    weights = [
        t("wq1"), t("wk1"), t("wv1"), t("wo1"), params["g1"], params["b1"],
        t("wq2"), t("wk2"), t("wv2"), t("wo2"), params["g2"], params["b2"],
        t("wf1"), params["bf1"], t("wf2"), params["bf2"], params["g3"], params["b3"],
    ]

    def kernel(x_ref, enc_ref, ebias_ref,
               wq1, wk1, wv1, wo1, g1, b1,
               wq2, wk2, wv2, wo2, g2, b2,
               wf1, bf1, wf2, bf2, g3, b3,
               out_ref):
        bt_, s_, d_ = x_ref.shape
        se_ = enc_ref.shape[1]

        # Token-major 2-D views (leading-dim merge: layout-preserving, no data movement).
        x2d = x_ref[...].reshape(bt_ * s_, d_)
        enc2d = enc_ref[...].reshape(bt_ * se_, d_)

        # --- 1) masked self-attention: dec_valid_lens = 1..S  =>  causal additive bias,
        #        built once per grid step (outside the head loop) ---
        rows = lax.broadcasted_iota(jnp.int32, (s_, s_), 0)
        cols = lax.broadcasted_iota(jnp.int32, (s_, s_), 1)
        causal_bias = jnp.where(cols <= rows, 0.0, NEG_FILL).astype(jnp.float32)

        att1 = _mha(x2d, x2d, bt_, s_, s_, wq1[...], wk1[...], wv1[...], wo1[...],
                    causal_bias, num_heads, matmul_dtype)
        y2d = _layernorm(x2d + att1, g1[...], b1[...])

        # --- 2) encoder-decoder cross attention, masked by enc_valid_lens (add. bias) ---
        att2 = _mha(y2d, enc2d, bt_, s_, se_, wq2[...], wk2[...], wv2[...], wo2[...],
                    ebias_ref[...], num_heads, matmul_dtype)
        z2d = _layernorm(y2d + att2, g2[...], b2[...])

        # --- 3) position-wise FFN: full-width matmuls over all bt*S tokens at once ---
        h1 = jnp.maximum(_mat(z2d, wf1[...], matmul_dtype) + bf1[...], 0.0)
        ffn = _mat(h1, wf2[...], matmul_dtype) + bf2[...]
        out2d = _layernorm(z2d + ffn, g3[...], b3[...])

        # TODO(synk): for production sizes, pad D to a multiple of 128 (or emit a
        # lane-dense (bt, S*D) slab) so stores become unmasked full-width vst.
        out_ref[...] = out2d.reshape(bt_, s_, d_).astype(out_ref.dtype)

    in_specs = (
        [pl.BlockSpec((bt, S, D), lambda i: (i, 0, 0)),     # x
         pl.BlockSpec((bt, Se, D), lambda i: (i, 0, 0)),    # enc_outputs
         pl.BlockSpec((bt, 1, Se), lambda i: (i, 0, 0))]    # enc additive mask bias
        # TODO(synk): at production weight sizes, single-buffer these constant operands
        # (pipeline_mode=pl.Buffered(1)) and/or keep them bf16 in HBM to fit v7x VMEM.
        + [pl.BlockSpec(w.shape, lambda i: (0, 0)) for w in weights]
    )

    out = pl.pallas_call(
        kernel,
        out_shape=jax.ShapeDtypeStruct((B, S, D), jnp.float32),
        grid=grid,
        in_specs=in_specs,
        out_specs=pl.BlockSpec((bt, S, D), lambda i: (i, 0, 0)),
        compiler_params=pltpu.CompilerParams(
            # Batch tiles are fully independent -> shard across both TCs on v7x.
            dimension_semantics=("parallel",),
            vmem_limit_bytes=_vmem_limit_bytes(),
        ),
    )(x, enc_outputs, enc_bias, *weights)

    new_state = (enc_outputs, enc_valid_lens, key_values)
    return out, new_state


# ----------------------------------------------------------------------------- reference

def decoder_block_reference(x, enc, evl, params, num_heads):
    """Plain per-batch / per-head JAX reference mirroring the PyTorch module."""
    B, S, D = x.shape
    Se = enc.shape[1]
    hd = D // num_heads
    scale = 1.0 / math.sqrt(hd)

    def mha(xb, kvb, wq, wk, wv, wo, mask):
        heads = []
        for h in range(num_heads):
            r = slice(h * hd, (h + 1) * hd)
            qh = xb @ wq[r].T
            kh = kvb @ wk[r].T
            vh = kvb @ wv[r].T
            s = (qh @ kh.T) * scale
            s = jnp.where(mask, s, NEG_FILL)
            p = jax.nn.softmax(s, axis=-1)
            heads.append(p @ vh)
        return jnp.concatenate(heads, axis=-1) @ wo.T

    rows = lax.broadcasted_iota(jnp.int32, (S, S), 0)
    cols = lax.broadcasted_iota(jnp.int32, (S, S), 1)
    causal = cols <= rows
    ecols = lax.broadcasted_iota(jnp.int32, (S, Se), 1)

    outs = []
    for b in range(B):
        xb, eb = x[b], enc[b]
        x2 = mha(xb, xb, params["wq1"], params["wk1"], params["wv1"], params["wo1"], causal)
        y = _layernorm(xb + x2, params["g1"], params["b1"])
        y2 = mha(y, eb, params["wq2"], params["wk2"], params["wv2"], params["wo2"],
                 ecols < evl[b])
        z = _layernorm(y + y2, params["g2"], params["b2"])
        h1 = jnp.maximum(z @ params["wf1"].T + params["bf1"], 0.0)
        ffn = h1 @ params["wf2"].T + params["bf2"]
        outs.append(_layernorm(z + ffn, params["g3"], params["b3"]))
    return jnp.stack(outs)


# ----------------------------------------------------------------------------- main

if __name__ == "__main__":
    B, S, Se = 2, 8, 8          # batch, decoder steps, encoder steps
    D, H, F = 32, 4, 64         # num_hiddens, num_heads, ffn_num_hiddens

    key = jax.random.PRNGKey(0)
    ks = jax.random.split(key, 16)

    def lin(k, out_f, in_f):    # deterministic small init, Linear convention (out, in)
        return jax.random.normal(k, (out_f, in_f), jnp.float32) * 0.1

    params = {
        # attention1 (self-attention), bias=False as in d2l MultiHeadAttention
        "wq1": lin(ks[0], D, D), "wk1": lin(ks[1], D, D),
        "wv1": lin(ks[2], D, D), "wo1": lin(ks[3], D, D),
        "g1": jnp.ones((1, D), jnp.float32), "b1": jnp.zeros((1, D), jnp.float32),
        # attention2 (cross-attention)
        "wq2": lin(ks[4], D, D), "wk2": lin(ks[5], D, D),
        "wv2": lin(ks[6], D, D), "wo2": lin(ks[7], D, D),
        "g2": jnp.ones((1, D), jnp.float32), "b2": jnp.zeros((1, D), jnp.float32),
        # PositionWiseFFN (with biases, like nn.Linear defaults)
        "wf1": lin(ks[8], F, D),
        "bf1": jax.random.normal(ks[9], (1, F), jnp.float32) * 0.1,
        "wf2": lin(ks[10], D, F),
        "bf2": jax.random.normal(ks[11], (1, D), jnp.float32) * 0.1,
        "g3": jnp.ones((1, D), jnp.float32), "b3": jnp.zeros((1, D), jnp.float32),
    }

    x = jax.random.normal(ks[12], (B, S, D), jnp.float32)
    enc_outputs = jax.random.normal(ks[13], (B, Se, D), jnp.float32)
    enc_valid_lens = jnp.array([5, 8], dtype=jnp.int32)

    state = (enc_outputs, enc_valid_lens, None)   # cache is None -> key_values = X
    out, _ = decoder_block(x, state, params, num_heads=H)
    out = jax.block_until_ready(out)

    ref = decoder_block_reference(x, enc_outputs, enc_valid_lens, params, H)
    assert out.shape == (B, S, D)
    max_err = float(jnp.max(jnp.abs(out - ref)))
    assert jnp.allclose(out, ref, atol=1e-4, rtol=1e-4), max_err
    print("KERNEL_OK")
</pallas_src>

<mosaic_0001>
module attributes {stable_mosaic.version = 11 : i64} {
  func.func @kernel(%arg0: i32, %arg1: memref<1x8x32xf32, #tpu.memory_space<vmem>>, %arg2: memref<1x8x32xf32, #tpu.memory_space<vmem>>, %arg3: memref<1x1x8xf32, #tpu.memory_space<vmem>>, %arg4: memref<32x32xf32, #tpu.memory_space<vmem>>, %arg5: memref<32x32xf32, #tpu.memory_space<vmem>>, %arg6: memref<32x32xf32, #tpu.memory_space<vmem>>, %arg7: memref<32x32xf32, #tpu.memory_space<vmem>>, %arg8: memref<1x32xf32, #tpu.memory_space<vmem>>, %arg9: memref<1x32xf32, #tpu.memory_space<vmem>>, %arg10: memref<32x32xf32, #tpu.memory_space<vmem>>, %arg11: memref<32x32xf32, #tpu.memory_space<vmem>>, %arg12: memref<32x32xf32, #tpu.memory_space<vmem>>, %arg13: memref<32x32xf32, #tpu.memory_space<vmem>>, %arg14: memref<1x32xf32, #tpu.memory_space<vmem>>, %arg15: memref<1x32xf32, #tpu.memory_space<vmem>>, %arg16: memref<32x64xf32, #tpu.memory_space<vmem>>, %arg17: memref<1x64xf32, #tpu.memory_space<vmem>>, %arg18: memref<64x32xf32, #tpu.memory_space<vmem>>, %arg19: memref<1x32xf32, #tpu.memory_space<vmem>>, %arg20: memref<1x32xf32, #tpu.memory_space<vmem>>, %arg21: memref<1x32xf32, #tpu.memory_space<vmem>>, %arg22: memref<1x8x32xf32, #tpu.memory_space<vmem>>) attributes {dimension_semantics = [#tpu.dimension_semantics<parallel>], iteration_bounds = array<i64: 2>, scalar_prefetch = 0 : i64, scratch_operands = 0 : i64, tpu.core_type = #tpu.core_type<tc>, window_params = [{transform_indices = @transform_0, window_bounds = array<i64: 1, 8, 32>}, {transform_indices = @transform_1, window_bounds = array<i64: 1, 8, 32>}, {transform_indices = @transform_2, window_bounds = array<i64: 1, 1, 8>}, {pipeline_mode = #tpu.pipeline_mode<synchronous>, transform_indices = @transform_3, window_bounds = array<i64: 32, 32>}, {pipeline_mode = #tpu.pipeline_mode<synchronous>, transform_indices = @transform_4, window_bounds = array<i64: 32, 32>}, {pipeline_mode = #tpu.pipeline_mode<synchronous>, transform_indices = @transform_5, window_bounds = array<i64: 32, 32>}, {pipeline_mode = #tpu.pipeline_mode<synchronous>, transform_indices = @transform_6, window_bounds = array<i64: 32, 32>}, {pipeline_mode = #tpu.pipeline_mode<synchronous>, transform_indices = @transform_7, window_bounds = array<i64: 1, 32>}, {pipeline_mode = #tpu.pipeline_mode<synchronous>, transform_indices = @transform_8, window_bounds = array<i64: 1, 32>}, {pipeline_mode = #tpu.pipeline_mode<synchronous>, transform_indices = @transform_9, window_bounds = array<i64: 32, 32>}, {pipeline_mode = #tpu.pipeline_mode<synchronous>, transform_indices = @transform_10, window_bounds = array<i64: 32, 32>}, {pipeline_mode = #tpu.pipeline_mode<synchronous>, transform_indices = @transform_11, window_bounds = array<i64: 32, 32>}, {pipeline_mode = #tpu.pipeline_mode<synchronous>, transform_indices = @transform_12, window_bounds = array<i64: 32, 32>}, {pipeline_mode = #tpu.pipeline_mode<synchronous>, transform_indices = @transform_13, window_bounds = array<i64: 1, 32>}, {pipeline_mode = #tpu.pipeline_mode<synchronous>, transform_indices = @transform_14, window_bounds = array<i64: 1, 32>}, {pipeline_mode = #tpu.pipeline_mode<synchronous>, transform_indices = @transform_15, window_bounds = array<i64: 32, 64>}, {pipeline_mode = #tpu.pipeline_mode<synchronous>, transform_indices = @transform_16, window_bounds = array<i64: 1, 64>}, {pipeline_mode = #tpu.pipeline_mode<synchronous>, transform_indices = @transform_17, window_bounds = array<i64: 64, 32>}, {pipeline_mode = #tpu.pipeline_mode<synchronous>, transform_indices = @transform_18, window_bounds = array<i64: 1, 32>}, {pipeline_mode = #tpu.pipeline_mode<synchronous>, transform_indices = @transform_19, window_bounds = array<i64: 1, 32>}, {pipeline_mode = #tpu.pipeline_mode<synchronous>, transform_indices = @transform_20, window_bounds = array<i64: 1, 32>}, {transform_indices = @transform_21, window_bounds = array<i64: 1, 8, 32>}]} {
    %c0 = arith.constant 0 : index
    %c0_0 = arith.constant 0 : index
    %c0_1 = arith.constant 0 : index
    %0 = vector.load %arg1[%c0, %c0_0, %c0_1] : memref<1x8x32xf32, #tpu.memory_space<vmem>>, vector<1x8x32xf32>
    %1 = vector.shape_cast %0 : vector<1x8x32xf32> to vector<8x32xf32>
    %c0_2 = arith.constant 0 : index
    %c0_3 = arith.constant 0 : index
    %c0_4 = arith.constant 0 : index
    %2 = vector.load %arg2[%c0_2, %c0_3, %c0_4] : memref<1x8x32xf32, #tpu.memory_space<vmem>>, vector<1x8x32xf32>
    %3 = vector.shape_cast %2 : vector<1x8x32xf32> to vector<8x32xf32>
    %4 = tpu.iota {dimensions = array<i32: 0>} : vector<8x8xi32>
    %5 = tpu.iota {dimensions = array<i32: 1>} : vector<8x8xi32>
    %6 = arith.cmpi sle, %5, %4 : vector<8x8xi32>
    %cst = arith.constant 0.000000e+00 : f32
    %cst_5 = arith.constant -1.000000e+06 : f32
    %7 = vector.broadcast %cst : f32 to vector<8x8xf32>
    %8 = vector.broadcast %cst_5 : f32 to vector<8x8xf32>
    %9 = arith.select %6, %7, %8 : vector<8x8xi1>, vector<8x8xf32>
    %c0_6 = arith.constant 0 : index
    %c0_7 = arith.constant 0 : index
    %10 = vector.load %arg4[%c0_6, %c0_7] : memref<32x32xf32, #tpu.memory_space<vmem>>, vector<32x32xf32>
    %c0_8 = arith.constant 0 : index
    %c0_9 = arith.constant 0 : index
    %11 = vector.load %arg5[%c0_8, %c0_9] : memref<32x32xf32, #tpu.memory_space<vmem>>, vector<32x32xf32>
    %c0_10 = arith.constant 0 : index
    %c0_11 = arith.constant 0 : index
    %12 = vector.load %arg6[%c0_10, %c0_11] : memref<32x32xf32, #tpu.memory_space<vmem>>, vector<32x32xf32>
    %c0_12 = arith.constant 0 : index
    %c0_13 = arith.constant 0 : index
    %13 = vector.load %arg7[%c0_12, %c0_13] : memref<32x32xf32, #tpu.memory_space<vmem>>, vector<32x32xf32>
    %cst_14 = arith.constant dense<0.000000e+00> : vector<8x32xf32>
    %14 = tpu.matmul %1, %10, %cst_14 {dimension_numbers = #tpu.dot_dimension_numbers<[1], [0], [0], [1], [0, 0, 1, 1], [], []>} : vector<8x32xf32>, vector<32x32xf32>, vector<8x32xf32> -> vector<8x32xf32>
    %cst_15 = arith.constant 0.353553385 : f32
    %15 = vector.broadcast %cst_15 : f32 to vector<8x32xf32>
    %16 = arith.mulf %14, %15 : vector<8x32xf32>
    %cst_16 = arith.constant dense<0.000000e+00> : vector<8x32xf32>
    %17 = tpu.matmul %1, %11, %cst_16 {dimension_numbers = #tpu.dot_dimension_numbers<[1], [0], [0], [1], [0, 0, 1, 1], [], []>} : vector<8x32xf32>, vector<32x32xf32>, vector<8x32xf32> -> vector<8x32xf32>
    %cst_17 = arith.constant dense<0.000000e+00> : vector<8x32xf32>
    %18 = tpu.matmul %1, %12, %cst_17 {dimension_numbers = #tpu.dot_dimension_numbers<[1], [0], [0], [1], [0, 0, 1, 1], [], []>} : vector<8x32xf32>, vector<32x32xf32>, vector<8x32xf32> -> vector<8x32xf32>
    %19 = vector.shape_cast %16 : vector<8x32xf32> to vector<1x8x32xf32>
    %20 = vector.shape_cast %17 : vector<8x32xf32> to vector<1x8x32xf32>
    %21 = vector.shape_cast %18 : vector<8x32xf32> to vector<1x8x32xf32>
    %22 = vector.extract_strided_slice %19 {offsets = [0, 0, 0], sizes = [1, 8, 8], strides = [1, 1, 1]} : vector<1x8x32xf32> to vector<1x8x8xf32>
    %23 = vector.extract_strided_slice %20 {offsets = [0, 0, 0], sizes = [1, 8, 8], strides = [1, 1, 1]} : vector<1x8x32xf32> to vector<1x8x8xf32>
    %24 = vector.extract_strided_slice %21 {offsets = [0, 0, 0], sizes = [1, 8, 8], strides = [1, 1, 1]} : vector<1x8x32xf32> to vector<1x8x8xf32>
    "tpu.trace_start"() <{level = 10 : i32, message = "bqd,bkd->bqk"}> : () -> ()
    %cst_18 = arith.constant dense<0.000000e+00> : vector<1x8x8xf32>
    %25 = tpu.matmul %22, %23, %cst_18 {dimension_numbers = #tpu.dot_dimension_numbers<[2], [2], [1], [1], [0, 0, 0, 1, 1, 1], [0], [0]>} : vector<1x8x8xf32>, vector<1x8x8xf32>, vector<1x8x8xf32> -> vector<1x8x8xf32>
    "tpu.trace_stop"() : () -> ()
    %26 = vector.shape_cast %9 : vector<8x8xf32> to vector<1x8x8xf32>
    %27 = arith.addf %25, %26 : vector<1x8x8xf32>
    %cst_19 = arith.constant dense<0xFF800000> : vector<1x8xf32>
    %28 = vector.multi_reduction <maximumf>, %27, %cst_19 [2] : vector<1x8x8xf32> to vector<1x8xf32>
    %29 = vector.shape_cast %28 : vector<1x8xf32> to vector<1x8x1xf32>
    %30 = vector.broadcast %29 : vector<1x8x1xf32> to vector<1x8x8xf32>
    %31 = arith.subf %27, %30 : vector<1x8x8xf32>
    %32 = math.exp %31 : vector<1x8x8xf32>
    %cst_20 = arith.constant dense<0.000000e+00> : vector<1x8xf32>
    %33 = vector.multi_reduction <add>, %32, %cst_20 [2] : vector<1x8x8xf32> to vector<1x8xf32>
    %34 = vector.shape_cast %33 : vector<1x8xf32> to vector<1x8x1xf32>
    %35 = tpu.reciprocal %34 {approx = true} : vector<1x8x1xf32> -> vector<1x8x1xf32>
    %36 = arith.mulf %34, %35 : vector<1x8x1xf32>
    %cst_21 = arith.constant 2.000000e+00 : f32
    %37 = vector.broadcast %cst_21 : f32 to vector<1x8x1xf32>
    %38 = arith.subf %37, %36 : vector<1x8x1xf32>
    %39 = arith.mulf %35, %38 : vector<1x8x1xf32>
    %40 = vector.broadcast %39 : vector<1x8x1xf32> to vector<1x8x8xf32>
    %41 = arith.mulf %32, %40 : vector<1x8x8xf32>
    "tpu.trace_start"() <{level = 10 : i32, message = "bqk,bkd->bqd"}> : () -> ()
    %cst_22 = arith.constant dense<0.000000e+00> : vector<1x8x8xf32>
    %42 = tpu.matmul %41, %24, %cst_22 {dimension_numbers = #tpu.dot_dimension_numbers<[2], [1], [1], [2], [0, 0, 0, 1, 1, 2], [0], [0]>} : vector<1x8x8xf32>, vector<1x8x8xf32>, vector<1x8x8xf32> -> vector<1x8x8xf32>
    "tpu.trace_stop"() : () -> ()
    %43 = vector.extract_strided_slice %19 {offsets = [0, 0, 8], sizes = [1, 8, 8], strides = [1, 1, 1]} : vector<1x8x32xf32> to vector<1x8x8xf32>
    %44 = vector.extract_strided_slice %20 {offsets = [0, 0, 8], sizes = [1, 8, 8], strides = [1, 1, 1]} : vector<1x8x32xf32> to vector<1x8x8xf32>
    %45 = vector.extract_strided_slice %21 {offsets = [0, 0, 8], sizes = [1, 8, 8], strides = [1, 1, 1]} : vector<1x8x32xf32> to vector<1x8x8xf32>
    "tpu.trace_start"() <{level = 10 : i32, message = "bqd,bkd->bqk"}> : () -> ()
    %cst_23 = arith.constant dense<0.000000e+00> : vector<1x8x8xf32>
    %46 = tpu.matmul %43, %44, %cst_23 {dimension_numbers = #tpu.dot_dimension_numbers<[2], [2], [1], [1], [0, 0, 0, 1, 1, 1], [0], [0]>} : vector<1x8x8xf32>, vector<1x8x8xf32>, vector<1x8x8xf32> -> vector<1x8x8xf32>
    "tpu.trace_stop"() : () -> ()
    %47 = vector.shape_cast %9 : vector<8x8xf32> to vector<1x8x8xf32>
    %48 = arith.addf %46, %47 : vector<1x8x8xf32>
    %cst_24 = arith.constant dense<0xFF800000> : vector<1x8xf32>
    %49 = vector.multi_reduction <maximumf>, %48, %cst_24 [2] : vector<1x8x8xf32> to vector<1x8xf32>
    %50 = vector.shape_cast %49 : vector<1x8xf32> to vector<1x8x1xf32>
    %51 = vector.broadcast %50 : vector<1x8x1xf32> to vector<1x8x8xf32>
    %52 = arith.subf %48, %51 : vector<1x8x8xf32>
    %53 = math.exp %52 : vector<1x8x8xf32>
    %cst_25 = arith.constant dense<0.000000e+00> : vector<1x8xf32>
    %54 = vector.multi_reduction <add>, %53, %cst_25 [2] : vector<1x8x8xf32> to vector<1x8xf32>
    %55 = vector.shape_cast %54 : vector<1x8xf32> to vector<1x8x1xf32>
    %56 = tpu.reciprocal %55 {approx = true} : vector<1x8x1xf32> -> vector<1x8x1xf32>
    %57 = arith.mulf %55, %56 : vector<1x8x1xf32>
    %cst_26 = arith.constant 2.000000e+00 : f32
    %58 = vector.broadcast %cst_26 : f32 to vector<1x8x1xf32>
    %59 = arith.subf %58, %57 : vector<1x8x1xf32>
    %60 = arith.mulf %56, %59 : vector<1x8x1xf32>
    %61 = vector.broadcast %60 : vector<1x8x1xf32> to vector<1x8x8xf32>
    %62 = arith.mulf %53, %61 : vector<1x8x8xf32>
    "tpu.trace_start"() <{level = 10 : i32, message = "bqk,bkd->bqd"}> : () -> ()
    %cst_27 = arith.constant dense<0.000000e+00> : vector<1x8x8xf32>
    %63 = tpu.matmul %62, %45, %cst_27 {dimension_numbers = #tpu.dot_dimension_numbers<[2], [1], [1], [2], [0, 0, 0, 1, 1, 2], [0], [0]>} : vector<1x8x8xf32>, vector<1x8x8xf32>, vector<1x8x8xf32> -> vector<1x8x8xf32>
    "tpu.trace_stop"() : () -> ()
    %64 = vector.extract_strided_slice %19 {offsets = [0, 0, 16], sizes = [1, 8, 8], strides = [1, 1, 1]} : vector<1x8x32xf32> to vector<1x8x8xf32>
    %65 = vector.extract_strided_slice %20 {offsets = [0, 0, 16], sizes = [1, 8, 8], strides = [1, 1, 1]} : vector<1x8x32xf32> to vector<1x8x8xf32>
    %66 = vector.extract_strided_slice %21 {offsets = [0, 0, 16], sizes = [1, 8, 8], strides = [1, 1, 1]} : vector<1x8x32xf32> to vector<1x8x8xf32>
    "tpu.trace_start"() <{level = 10 : i32, message = "bqd,bkd->bqk"}> : () -> ()
    %cst_28 = arith.constant dense<0.000000e+00> : vector<1x8x8xf32>
    %67 = tpu.matmul %64, %65, %cst_28 {dimension_numbers = #tpu.dot_dimension_numbers<[2], [2], [1], [1], [0, 0, 0, 1, 1, 1], [0], [0]>} : vector<1x8x8xf32>, vector<1x8x8xf32>, vector<1x8x8xf32> -> vector<1x8x8xf32>
    "tpu.trace_stop"() : () -> ()
    %68 = vector.shape_cast %9 : vector<8x8xf32> to vector<1x8x8xf32>
    %69 = arith.addf %67, %68 : vector<1x8x8xf32>
    %cst_29 = arith.constant dense<0xFF800000> : vector<1x8xf32>
    %70 = vector.multi_reduction <maximumf>, %69, %cst_29 [2] : vector<1x8x8xf32> to vector<1x8xf32>
    %71 = vector.shape_cast %70 : vector<1x8xf32> to vector<1x8x1xf32>
    %72 = vector.broadcast %71 : vector<1x8x1xf32> to vector<1x8x8xf32>
    %73 = arith.subf %69, %72 : vector<1x8x8xf32>
    %74 = math.exp %73 : vector<1x8x8xf32>
    %cst_30 = arith.constant dense<0.000000e+00> : vector<1x8xf32>
    %75 = vector.multi_reduction <add>, %74, %cst_30 [2] : vector<1x8x8xf32> to vector<1x8xf32>
    %76 = vector.shape_cast %75 : vector<1x8xf32> to vector<1x8x1xf32>
    %77 = tpu.reciprocal %76 {approx = true} : vector<1x8x1xf32> -> vector<1x8x1xf32>
    %78 = arith.mulf %76, %77 : vector<1x8x1xf32>
    %cst_31 = arith.constant 2.000000e+00 : f32
    %79 = vector.broadcast %cst_31 : f32 to vector<1x8x1xf32>
    %80 = arith.subf %79, %78 : vector<1x8x1xf32>
    %81 = arith.mulf %77, %80 : vector<1x8x1xf32>
    %82 = vector.broadcast %81 : vector<1x8x1xf32> to vector<1x8x8xf32>
    %83 = arith.mulf %74, %82 : vector<1x8x8xf32>
    "tpu.trace_start"() <{level = 10 : i32, message = "bqk,bkd->bqd"}> : () -> ()
    %cst_32 = arith.constant dense<0.000000e+00> : vector<1x8x8xf32>
    %84 = tpu.matmul %83, %66, %cst_32 {dimension_numbers = #tpu.dot_dimension_numbers<[2], [1], [1], [2], [0, 0, 0, 1, 1, 2], [0], [0]>} : vector<1x8x8xf32>, vector<1x8x8xf32>, vector<1x8x8xf32> -> vector<1x8x8xf32>
    "tpu.trace_stop"() : () -> ()
    %85 = vector.extract_strided_slice %19 {offsets = [0, 0, 24], sizes = [1, 8, 8], strides = [1, 1, 1]} : vector<1x8x32xf32> to vector<1x8x8xf32>
    %86 = vector.extract_strided_slice %20 {offsets = [0, 0, 24], sizes = [1, 8, 8], strides = [1, 1, 1]} : vector<1x8x32xf32> to vector<1x8x8xf32>
    %87 = vector.extract_strided_slice %21 {offsets = [0, 0, 24], sizes = [1, 8, 8], strides = [1, 1, 1]} : vector<1x8x32xf32> to vector<1x8x8xf32>
    "tpu.trace_start"() <{level = 10 : i32, message = "bqd,bkd->bqk"}> : () -> ()
    %cst_33 = arith.constant dense<0.000000e+00> : vector<1x8x8xf32>
    %88 = tpu.matmul %85, %86, %cst_33 {dimension_numbers = #tpu.dot_dimension_numbers<[2], [2], [1], [1], [0, 0, 0, 1, 1, 1], [0], [0]>} : vector<1x8x8xf32>, vector<1x8x8xf32>, vector<1x8x8xf32> -> vector<1x8x8xf32>
    "tpu.trace_stop"() : () -> ()
    %89 = vector.shape_cast %9 : vector<8x8xf32> to vector<1x8x8xf32>
    %90 = arith.addf %88, %89 : vector<1x8x8xf32>
    %cst_34 = arith.constant dense<0xFF800000> : vector<1x8xf32>
    %91 = vector.multi_reduction <maximumf>, %90, %cst_34 [2] : vector<1x8x8xf32> to vector<1x8xf32>
    %92 = vector.shape_cast %91 : vector<1x8xf32> to vector<1x8x1xf32>
    %93 = vector.broadcast %92 : vector<1x8x1xf32> to vector<1x8x8xf32>
    %94 = arith.subf %90, %93 : vector<1x8x8xf32>
    %95 = math.exp %94 : vector<1x8x8xf32>
    %cst_35 = arith.constant dense<0.000000e+00> : vector<1x8xf32>
    %96 = vector.multi_reduction <add>, %95, %cst_35 [2] : vector<1x8x8xf32> to vector<1x8xf32>
    %97 = vector.shape_cast %96 : vector<1x8xf32> to vector<1x8x1xf32>
    %98 = tpu.reciprocal %97 {approx = true} : vector<1x8x1xf32> -> vector<1x8x1xf32>
    %99 = arith.mulf %97, %98 : vector<1x8x1xf32>
    %cst_36 = arith.constant 2.000000e+00 : f32
    %100 = vector.broadcast %cst_36 : f32 to vector<1x8x1xf32>
    %101 = arith.subf %100, %99 : vector<1x8x1xf32>
    %102 = arith.mulf %98, %101 : vector<1x8x1xf32>
    %103 = vector.broadcast %102 : vector<1x8x1xf32> to vector<1x8x8xf32>
    %104 = arith.mulf %95, %103 : vector<1x8x8xf32>
    "tpu.trace_start"() <{level = 10 : i32, message = "bqk,bkd->bqd"}> : () -> ()
    %cst_37 = arith.constant dense<0.000000e+00> : vector<1x8x8xf32>
    %105 = tpu.matmul %104, %87, %cst_37 {dimension_numbers = #tpu.dot_dimension_numbers<[2], [1], [1], [2], [0, 0, 0, 1, 1, 2], [0], [0]>} : vector<1x8x8xf32>, vector<1x8x8xf32>, vector<1x8x8xf32> -> vector<1x8x8xf32>
    "tpu.trace_stop"() : () -> ()
    %106 = tpu.concatenate %42, %63, %84, %105 in 2 : vector<1x8x8xf32>, vector<1x8x8xf32>, vector<1x8x8xf32>, vector<1x8x8xf32> -> vector<1x8x32xf32>
    %107 = vector.shape_cast %106 : vector<1x8x32xf32> to vector<8x32xf32>
    %cst_38 = arith.constant dense<0.000000e+00> : vector<8x32xf32>
    %108 = tpu.matmul %107, %13, %cst_38 {dimension_numbers = #tpu.dot_dimension_numbers<[1], [0], [0], [1], [0, 0, 1, 1], [], []>} : vector<8x32xf32>, vector<32x32xf32>, vector<8x32xf32> -> vector<8x32xf32>
    %109 = arith.addf %1, %108 : vector<8x32xf32>
    %c0_39 = arith.constant 0 : index
    %c0_40 = arith.constant 0 : index
    %110 = vector.load %arg8[%c0_39, %c0_40] : memref<1x32xf32, #tpu.memory_space<vmem>>, vector<1x32xf32>
    %c0_41 = arith.constant 0 : index
    %c0_42 = arith.constant 0 : index
    %111 = vector.load %arg9[%c0_41, %c0_42] : memref<1x32xf32, #tpu.memory_space<vmem>>, vector<1x32xf32>
    %cst_43 = arith.constant dense<0.000000e+00> : vector<8xf32>
    %112 = vector.multi_reduction <add>, %109, %cst_43 [1] : vector<8x32xf32> to vector<8xf32>
    %113 = vector.shape_cast %112 : vector<8xf32> to vector<8x1xf32>
    %cst_44 = arith.constant 3.200000e+01 : f32
    %114 = vector.broadcast %cst_44 : f32 to vector<8x1xf32>
    %115 = arith.divf %113, %114 : vector<8x1xf32>
    %116 = vector.broadcast %115 : vector<8x1xf32> to vector<8x32xf32>
    %117 = arith.subf %109, %116 : vector<8x32xf32>
    %118 = arith.mulf %117, %117 : vector<8x32xf32>
    %cst_45 = arith.constant dense<0.000000e+00> : vector<8xf32>
    %119 = vector.multi_reduction <add>, %118, %cst_45 [1] : vector<8x32xf32> to vector<8xf32>
    %120 = vector.shape_cast %119 : vector<8xf32> to vector<8x1xf32>
    %cst_46 = arith.constant 3.200000e+01 : f32
    %121 = vector.broadcast %cst_46 : f32 to vector<8x1xf32>
    %122 = arith.divf %120, %121 : vector<8x1xf32>
    %123 = vector.broadcast %115 : vector<8x1xf32> to vector<8x32xf32>
    %124 = arith.subf %109, %123 : vector<8x32xf32>
    %cst_47 = arith.constant 9.99999974E-6 : f32
    %125 = vector.broadcast %cst_47 : f32 to vector<8x1xf32>
    %126 = arith.addf %122, %125 : vector<8x1xf32>
    %127 = math.rsqrt %126 : vector<8x1xf32>
    %128 = vector.broadcast %127 : vector<8x1xf32> to vector<8x32xf32>
    %129 = arith.mulf %124, %128 : vector<8x32xf32>
    %130 = vector.broadcast %110 : vector<1x32xf32> to vector<8x32xf32>
    %131 = arith.mulf %129, %130 : vector<8x32xf32>
    %132 = vector.broadcast %111 : vector<1x32xf32> to vector<8x32xf32>
    %133 = arith.addf %131, %132 : vector<8x32xf32>
    %c0_48 = arith.constant 0 : index
    %c0_49 = arith.constant 0 : index
    %134 = vector.load %arg10[%c0_48, %c0_49] : memref<32x32xf32, #tpu.memory_space<vmem>>, vector<32x32xf32>
    %c0_50 = arith.constant 0 : index
    %c0_51 = arith.constant 0 : index
    %135 = vector.load %arg11[%c0_50, %c0_51] : memref<32x32xf32, #tpu.memory_space<vmem>>, vector<32x32xf32>
    %c0_52 = arith.constant 0 : index
    %c0_53 = arith.constant 0 : index
    %136 = vector.load %arg12[%c0_52, %c0_53] : memref<32x32xf32, #tpu.memory_space<vmem>>, vector<32x32xf32>
    %c0_54 = arith.constant 0 : index
    %c0_55 = arith.constant 0 : index
    %137 = vector.load %arg13[%c0_54, %c0_55] : memref<32x32xf32, #tpu.memory_space<vmem>>, vector<32x32xf32>
    %c0_56 = arith.constant 0 : index
    %c0_57 = arith.constant 0 : index
    %c0_58 = arith.constant 0 : index
    %138 = vector.load %arg3[%c0_56, %c0_57, %c0_58] : memref<1x1x8xf32, #tpu.memory_space<vmem>>, vector<1x1x8xf32>
    %cst_59 = arith.constant dense<0.000000e+00> : vector<8x32xf32>
    %139 = tpu.matmul %133, %134, %cst_59 {dimension_numbers = #tpu.dot_dimension_numbers<[1], [0], [0], [1], [0, 0, 1, 1], [], []>} : vector<8x32xf32>, vector<32x32xf32>, vector<8x32xf32> -> vector<8x32xf32>
    %cst_60 = arith.constant 0.353553385 : f32
    %140 = vector.broadcast %cst_60 : f32 to vector<8x32xf32>
    %141 = arith.mulf %139, %140 : vector<8x32xf32>
    %cst_61 = arith.constant dense<0.000000e+00> : vector<8x32xf32>
    %142 = tpu.matmul %3, %135, %cst_61 {dimension_numbers = #tpu.dot_dimension_numbers<[1], [0], [0], [1], [0, 0, 1, 1], [], []>} : vector<8x32xf32>, vector<32x32xf32>, vector<8x32xf32> -> vector<8x32xf32>
    %cst_62 = arith.constant dense<0.000000e+00> : vector<8x32xf32>
    %143 = tpu.matmul %3, %136, %cst_62 {dimension_numbers = #tpu.dot_dimension_numbers<[1], [0], [0], [1], [0, 0, 1, 1], [], []>} : vector<8x32xf32>, vector<32x32xf32>, vector<8x32xf32> -> vector<8x32xf32>
    %144 = vector.shape_cast %141 : vector<8x32xf32> to vector<1x8x32xf32>
    %145 = vector.shape_cast %142 : vector<8x32xf32> to vector<1x8x32xf32>
    %146 = vector.shape_cast %143 : vector<8x32xf32> to vector<1x8x32xf32>
    %147 = vector.extract_strided_slice %144 {offsets = [0, 0, 0], sizes = [1, 8, 8], strides = [1, 1, 1]} : vector<1x8x32xf32> to vector<1x8x8xf32>
    %148 = vector.extract_strided_slice %145 {offsets = [0, 0, 0], sizes = [1, 8, 8], strides = [1, 1, 1]} : vector<1x8x32xf32> to vector<1x8x8xf32>
    %149 = vector.extract_strided_slice %146 {offsets = [0, 0, 0], sizes = [1, 8, 8], strides = [1, 1, 1]} : vector<1x8x32xf32> to vector<1x8x8xf32>
    "tpu.trace_start"() <{level = 10 : i32, message = "bqd,bkd->bqk"}> : () -> ()
    %cst_63 = arith.constant dense<0.000000e+00> : vector<1x8x8xf32>
    %150 = tpu.matmul %147, %148, %cst_63 {dimension_numbers = #tpu.dot_dimension_numbers<[2], [2], [1], [1], [0, 0, 0, 1, 1, 1], [0], [0]>} : vector<1x8x8xf32>, vector<1x8x8xf32>, vector<1x8x8xf32> -> vector<1x8x8xf32>
    "tpu.trace_stop"() : () -> ()
    %151 = vector.broadcast %138 : vector<1x1x8xf32> to vector<1x8x8xf32>
    %152 = arith.addf %150, %151 : vector<1x8x8xf32>
    %cst_64 = arith.constant dense<0xFF800000> : vector<1x8xf32>
    %153 = vector.multi_reduction <maximumf>, %152, %cst_64 [2] : vector<1x8x8xf32> to vector<1x8xf32>
    %154 = vector.shape_cast %153 : vector<1x8xf32> to vector<1x8x1xf32>
    %155 = vector.broadcast %154 : vector<1x8x1xf32> to vector<1x8x8xf32>
    %156 = arith.subf %152, %155 : vector<1x8x8xf32>
    %157 = math.exp %156 : vector<1x8x8xf32>
    %cst_65 = arith.constant dense<0.000000e+00> : vector<1x8xf32>
    %158 = vector.multi_reduction <add>, %157, %cst_65 [2] : vector<1x8x8xf32> to vector<1x8xf32>
    %159 = vector.shape_cast %158 : vector<1x8xf32> to vector<1x8x1xf32>
    %160 = tpu.reciprocal %159 {approx = true} : vector<1x8x1xf32> -> vector<1x8x1xf32>
    %161 = arith.mulf %159, %160 : vector<1x8x1xf32>
    %cst_66 = arith.constant 2.000000e+00 : f32
    %162 = vector.broadcast %cst_66 : f32 to vector<1x8x1xf32>
    %163 = arith.subf %162, %161 : vector<1x8x1xf32>
    %164 = arith.mulf %160, %163 : vector<1x8x1xf32>
    %165 = vector.broadcast %164 : vector<1x8x1xf32> to vector<1x8x8xf32>
    %166 = arith.mulf %157, %165 : vector<1x8x8xf32>
    "tpu.trace_start"() <{level = 10 : i32, message = "bqk,bkd->bqd"}> : () -> ()
    %cst_67 = arith.constant dense<0.000000e+00> : vector<1x8x8xf32>
    %167 = tpu.matmul %166, %149, %cst_67 {dimension_numbers = #tpu.dot_dimension_numbers<[2], [1], [1], [2], [0, 0, 0, 1, 1, 2], [0], [0]>} : vector<1x8x8xf32>, vector<1x8x8xf32>, vector<1x8x8xf32> -> vector<1x8x8xf32>
    "tpu.trace_stop"() : () -> ()
    %168 = vector.extract_strided_slice %144 {offsets = [0, 0, 8], sizes = [1, 8, 8], strides = [1, 1, 1]} : vector<1x8x32xf32> to vector<1x8x8xf32>
    %169 = vector.extract_strided_slice %145 {offsets = [0, 0, 8], sizes = [1, 8, 8], strides = [1, 1, 1]} : vector<1x8x32xf32> to vector<1x8x8xf32>
    %170 = vector.extract_strided_slice %146 {offsets = [0, 0, 8], sizes = [1, 8, 8], strides = [1, 1, 1]} : vector<1x8x32xf32> to vector<1x8x8xf32>
    "tpu.trace_start"() <{level = 10 : i32, message = "bqd,bkd->bqk"}> : () -> ()
    %cst_68 = arith.constant dense<0.000000e+00> : vector<1x8x8xf32>
    %171 = tpu.matmul %168, %169, %cst_68 {dimension_numbers = #tpu.dot_dimension_numbers<[2], [2], [1], [1], [0, 0, 0, 1, 1, 1], [0], [0]>} : vector<1x8x8xf32>, vector<1x8x8xf32>, vector<1x8x8xf32> -> vector<1x8x8xf32>
    "tpu.trace_stop"() : () -> ()
    %172 = vector.broadcast %138 : vector<1x1x8xf32> to vector<1x8x8xf32>
    %173 = arith.addf %171, %172 : vector<1x8x8xf32>
    %cst_69 = arith.constant dense<0xFF800000> : vector<1x8xf32>
    %174 = vector.multi_reduction <maximumf>, %173, %cst_69 [2] : vector<1x8x8xf32> to vector<1x8xf32>
    %175 = vector.shape_cast %174 : vector<1x8xf32> to vector<1x8x1xf32>
    %176 = vector.broadcast %175 : vector<1x8x1xf32> to vector<1x8x8xf32>
    %177 = arith.subf %173, %176 : vector<1x8x8xf32>
    %178 = math.exp %177 : vector<1x8x8xf32>
    %cst_70 = arith.constant dense<0.000000e+00> : vector<1x8xf32>
    %179 = vector.multi_reduction <add>, %178, %cst_70 [2] : vector<1x8x8xf32> to vector<1x8xf32>
    %180 = vector.shape_cast %179 : vector<1x8xf32> to vector<1x8x1xf32>
    %181 = tpu.reciprocal %180 {approx = true} : vector<1x8x1xf32> -> vector<1x8x1xf32>
    %182 = arith.mulf %180, %181 : vector<1x8x1xf32>
    %cst_71 = arith.constant 2.000000e+00 : f32
    %183 = vector.broadcast %cst_71 : f32 to vector<1x8x1xf32>
    %184 = arith.subf %183, %182 : vector<1x8x1xf32>
    %185 = arith.mulf %181, %184 : vector<1x8x1xf32>
    %186 = vector.broadcast %185 : vector<1x8x1xf32> to vector<1x8x8xf32>
    %187 = arith.mulf %178, %186 : vector<1x8x8xf32>
    "tpu.trace_start"() <{level = 10 : i32, message = "bqk,bkd->bqd"}> : () -> ()
    %cst_72 = arith.constant dense<0.000000e+00> : vector<1x8x8xf32>
    %188 = tpu.matmul %187, %170, %cst_72 {dimension_numbers = #tpu.dot_dimension_numbers<[2], [1], [1], [2], [0, 0, 0, 1, 1, 2], [0], [0]>} : vector<1x8x8xf32>, vector<1x8x8xf32>, vector<1x8x8xf32> -> vector<1x8x8xf32>
    "tpu.trace_stop"() : () -> ()
    %189 = vector.extract_strided_slice %144 {offsets = [0, 0, 16], sizes = [1, 8, 8], strides = [1, 1, 1]} : vector<1x8x32xf32> to vector<1x8x8xf32>
    %190 = vector.extract_strided_slice %145 {offsets = [0, 0, 16], sizes = [1, 8, 8], strides = [1, 1, 1]} : vector<1x8x32xf32> to vector<1x8x8xf32>
    %191 = vector.extract_strided_slice %146 {offsets = [0, 0, 16], sizes = [1, 8, 8], strides = [1, 1, 1]} : vector<1x8x32xf32> to vector<1x8x8xf32>
    "tpu.trace_start"() <{level = 10 : i32, message = "bqd,bkd->bqk"}> : () -> ()
    %cst_73 = arith.constant dense<0.000000e+00> : vector<1x8x8xf32>
    %192 = tpu.matmul %189, %190, %cst_73 {dimension_numbers = #tpu.dot_dimension_numbers<[2], [2], [1], [1], [0, 0, 0, 1, 1, 1], [0], [0]>} : vector<1x8x8xf32>, vector<1x8x8xf32>, vector<1x8x8xf32> -> vector<1x8x8xf32>
    "tpu.trace_stop"() : () -> ()
    %193 = vector.broadcast %138 : vector<1x1x8xf32> to vector<1x8x8xf32>
    %194 = arith.addf %192, %193 : vector<1x8x8xf32>
    %cst_74 = arith.constant dense<0xFF800000> : vector<1x8xf32>
    %195 = vector.multi_reduction <maximumf>, %194, %cst_74 [2] : vector<1x8x8xf32> to vector<1x8xf32>
    %196 = vector.shape_cast %195 : vector<1x8xf32> to vector<1x8x1xf32>
    %197 = vector.broadcast %196 : vector<1x8x1xf32> to vector<1x8x8xf32>
    %198 = arith.subf %194, %197 : vector<1x8x8xf32>
    %199 = math.exp %198 : vector<1x8x8xf32>
    %cst_75 = arith.constant dense<0.000000e+00> : vector<1x8xf32>
    %200 = vector.multi_reduction <add>, %199, %cst_75 [2] : vector<1x8x8xf32> to vector<1x8xf32>
    %201 = vector.shape_cast %200 : vector<1x8xf32> to vector<1x8x1xf32>
    %202 = tpu.reciprocal %201 {approx = true} : vector<1x8x1xf32> -> vector<1x8x1xf32>
    %203 = arith.mulf %201, %202 : vector<1x8x1xf32>
    %cst_76 = arith.constant 2.000000e+00 : f32
    %204 = vector.broadcast %cst_76 : f32 to vector<1x8x1xf32>
    %205 = arith.subf %204, %203 : vector<1x8x1xf32>
    %206 = arith.mulf %202, %205 : vector<1x8x1xf32>
    %207 = vector.broadcast %206 : vector<1x8x1xf32> to vector<1x8x8xf32>
    %208 = arith.mulf %199, %207 : vector<1x8x8xf32>
    "tpu.trace_start"() <{level = 10 : i32, message = "bqk,bkd->bqd"}> : () -> ()
    %cst_77 = arith.constant dense<0.000000e+00> : vector<1x8x8xf32>
    %209 = tpu.matmul %208, %191, %cst_77 {dimension_numbers = #tpu.dot_dimension_numbers<[2], [1], [1], [2], [0, 0, 0, 1, 1, 2], [0], [0]>} : vector<1x8x8xf32>, vector<1x8x8xf32>, vector<1x8x8xf32> -> vector<1x8x8xf32>
    "tpu.trace_stop"() : () -> ()
    %210 = vector.extract_strided_slice %144 {offsets = [0, 0, 24], sizes = [1, 8, 8], strides = [1, 1, 1]} : vector<1x8x32xf32> to vector<1x8x8xf32>
    %211 = vector.extract_strided_slice %145 {offsets = [0, 0, 24], sizes = [1, 8, 8], strides = [1, 1, 1]} : vector<1x8x32xf32> to vector<1x8x8xf32>
    %212 = vector.extract_strided_slice %146 {offsets = [0, 0, 24], sizes = [1, 8, 8], strides = [1, 1, 1]} : vector<1x8x32xf32> to vector<1x8x8xf32>
    "tpu.trace_start"() <{level = 10 : i32, message = "bqd,bkd->bqk"}> : () -> ()
    %cst_78 = arith.constant dense<0.000000e+00> : vector<1x8x8xf32>
    %213 = tpu.matmul %210, %211, %cst_78 {dimension_numbers = #tpu.dot_dimension_numbers<[2], [2], [1], [1], [0, 0, 0, 1, 1, 1], [0], [0]>} : vector<1x8x8xf32>, vector<1x8x8xf32>, vector<1x8x8xf32> -> vector<1x8x8xf32>
    "tpu.trace_stop"() : () -> ()
    %214 = vector.broadcast %138 : vector<1x1x8xf32> to vector<1x8x8xf32>
    %215 = arith.addf %213, %214 : vector<1x8x8xf32>
    %cst_79 = arith.constant dense<0xFF800000> : vector<1x8xf32>
    %216 = vector.multi_reduction <maximumf>, %215, %cst_79 [2] : vector<1x8x8xf32> to vector<1x8xf32>
    %217 = vector.shape_cast %216 : vector<1x8xf32> to vector<1x8x1xf32>
    %218 = vector.broadcast %217 : vector<1x8x1xf32> to vector<1x8x8xf32>
    %219 = arith.subf %215, %218 : vector<1x8x8xf32>
    %220 = math.exp %219 : vector<1x8x8xf32>
    %cst_80 = arith.constant dense<0.000000e+00> : vector<1x8xf32>
    %221 = vector.multi_reduction <add>, %220, %cst_80 [2] : vector<1x8x8xf32> to vector<1x8xf32>
    %222 = vector.shape_cast %221 : vector<1x8xf32> to vector<1x8x1xf32>
    %223 = tpu.reciprocal %222 {approx = true} : vector<1x8x1xf32> -> vector<1x8x1xf32>
    %224 = arith.mulf %222, %223 : vector<1x8x1xf32>
    %cst_81 = arith.constant 2.000000e+00 : f32
    %225 = vector.broadcast %cst_81 : f32 to vector<1x8x1xf32>
    %226 = arith.subf %225, %224 : vector<1x8x1xf32>
    %227 = arith.mulf %223, %226 : vector<1x8x1xf32>
    %228 = vector.broadcast %227 : vector<1x8x1xf32> to vector<1x8x8xf32>
    %229 = arith.mulf %220, %228 : vector<1x8x8xf32>
    "tpu.trace_start"() <{level = 10 : i32, message = "bqk,bkd->bqd"}> : () -> ()
    %cst_82 = arith.constant dense<0.000000e+00> : vector<1x8x8xf32>
    %230 = tpu.matmul %229, %212, %cst_82 {dimension_numbers = #tpu.dot_dimension_numbers<[2], [1], [1], [2], [0, 0, 0, 1, 1, 2], [0], [0]>} : vector<1x8x8xf32>, vector<1x8x8xf32>, vector<1x8x8xf32> -> vector<1x8x8xf32>
    "tpu.trace_stop"() : () -> ()
    %231 = tpu.concatenate %167, %188, %209, %230 in 2 : vector<1x8x8xf32>, vector<1x8x8xf32>, vector<1x8x8xf32>, vector<1x8x8xf32> -> vector<1x8x32xf32>
    %232 = vector.shape_cast %231 : vector<1x8x32xf32> to vector<8x32xf32>
    %cst_83 = arith.constant dense<0.000000e+00> : vector<8x32xf32>
    %233 = tpu.matmul %232, %137, %cst_83 {dimension_numbers = #tpu.dot_dimension_numbers<[1], [0], [0], [1], [0, 0, 1, 1], [], []>} : vector<8x32xf32>, vector<32x32xf32>, vector<8x32xf32> -> vector<8x32xf32>
    %234 = arith.addf %133, %233 : vector<8x32xf32>
    %c0_84 = arith.constant 0 : index
    %c0_85 = arith.constant 0 : index
    %235 = vector.load %arg14[%c0_84, %c0_85] : memref<1x32xf32, #tpu.memory_space<vmem>>, vector<1x32xf32>
    %c0_86 = arith.constant 0 : index
    %c0_87 = arith.constant 0 : index
    %236 = vector.load %arg15[%c0_86, %c0_87] : memref<1x32xf32, #tpu.memory_space<vmem>>, vector<1x32xf32>
    %cst_88 = arith.constant dense<0.000000e+00> : vector<8xf32>
    %237 = vector.multi_reduction <add>, %234, %cst_88 [1] : vector<8x32xf32> to vector<8xf32>
    %238 = vector.shape_cast %237 : vector<8xf32> to vector<8x1xf32>
    %cst_89 = arith.constant 3.200000e+01 : f32
    %239 = vector.broadcast %cst_89 : f32 to vector<8x1xf32>
    %240 = arith.divf %238, %239 : vector<8x1xf32>
    %241 = vector.broadcast %240 : vector<8x1xf32> to vector<8x32xf32>
    %242 = arith.subf %234, %241 : vector<8x32xf32>
    %243 = arith.mulf %242, %242 : vector<8x32xf32>
    %cst_90 = arith.constant dense<0.000000e+00> : vector<8xf32>
    %244 = vector.multi_reduction <add>, %243, %cst_90 [1] : vector<8x32xf32> to vector<8xf32>
    %245 = vector.shape_cast %244 : vector<8xf32> to vector<8x1xf32>
    %cst_91 = arith.constant 3.200000e+01 : f32
    %246 = vector.broadcast %cst_91 : f32 to vector<8x1xf32>
    %247 = arith.divf %245, %246 : vector<8x1xf32>
    %248 = vector.broadcast %240 : vector<8x1xf32> to vector<8x32xf32>
    %249 = arith.subf %234, %248 : vector<8x32xf32>
    %cst_92 = arith.constant 9.99999974E-6 : f32
    %250 = vector.broadcast %cst_92 : f32 to vector<8x1xf32>
    %251 = arith.addf %247, %250 : vector<8x1xf32>
    %252 = math.rsqrt %251 : vector<8x1xf32>
    %253 = vector.broadcast %252 : vector<8x1xf32> to vector<8x32xf32>
    %254 = arith.mulf %249, %253 : vector<8x32xf32>
    %255 = vector.broadcast %235 : vector<1x32xf32> to vector<8x32xf32>
    %256 = arith.mulf %254, %255 : vector<8x32xf32>
    %257 = vector.broadcast %236 : vector<1x32xf32> to vector<8x32xf32>
    %258 = arith.addf %256, %257 : vector<8x32xf32>
    %c0_93 = arith.constant 0 : index
    %c0_94 = arith.constant 0 : index
    %259 = vector.load %arg16[%c0_93, %c0_94] : memref<32x64xf32, #tpu.memory_space<vmem>>, vector<32x64xf32>
    %cst_95 = arith.constant dense<0.000000e+00> : vector<8x64xf32>
    %260 = tpu.matmul %258, %259, %cst_95 {dimension_numbers = #tpu.dot_dimension_numbers<[1], [0], [0], [1], [0, 0, 1, 1], [], []>} : vector<8x32xf32>, vector<32x64xf32>, vector<8x64xf32> -> vector<8x64xf32>
    %c0_96 = arith.constant 0 : index
    %c0_97 = arith.constant 0 : index
    %261 = vector.load %arg17[%c0_96, %c0_97] : memref<1x64xf32, #tpu.memory_space<vmem>>, vector<1x64xf32>
    %262 = vector.broadcast %261 : vector<1x64xf32> to vector<8x64xf32>
    %263 = arith.addf %260, %262 : vector<8x64xf32>
    %cst_98 = arith.constant 0.000000e+00 : f32
    %264 = vector.broadcast %cst_98 : f32 to vector<8x64xf32>
    %265 = arith.maximumf %263, %264 : vector<8x64xf32>
    %c0_99 = arith.constant 0 : index
    %c0_100 = arith.constant 0 : index
    %266 = vector.load %arg18[%c0_99, %c0_100] : memref<64x32xf32, #tpu.memory_space<vmem>>, vector<64x32xf32>
    %cst_101 = arith.constant dense<0.000000e+00> : vector<8x32xf32>
    %267 = tpu.matmul %265, %266, %cst_101 {dimension_numbers = #tpu.dot_dimension_numbers<[1], [0], [0], [1], [0, 0, 1, 1], [], []>} : vector<8x64xf32>, vector<64x32xf32>, vector<8x32xf32> -> vector<8x32xf32>
    %c0_102 = arith.constant 0 : index
    %c0_103 = arith.constant 0 : index
    %268 = vector.load %arg19[%c0_102, %c0_103] : memref<1x32xf32, #tpu.memory_space<vmem>>, vector<1x32xf32>
    %269 = vector.broadcast %268 : vector<1x32xf32> to vector<8x32xf32>
    %270 = arith.addf %267, %269 : vector<8x32xf32>
    %271 = arith.addf %258, %270 : vector<8x32xf32>
    %c0_104 = arith.constant 0 : index
    %c0_105 = arith.constant 0 : index
    %272 = vector.load %arg20[%c0_104, %c0_105] : memref<1x32xf32, #tpu.memory_space<vmem>>, vector<1x32xf32>
    %c0_106 = arith.constant 0 : index
    %c0_107 = arith.constant 0 : index
    %273 = vector.load %arg21[%c0_106, %c0_107] : memref<1x32xf32, #tpu.memory_space<vmem>>, vector<1x32xf32>
    %cst_108 = arith.constant dense<0.000000e+00> : vector<8xf32>
    %274 = vector.multi_reduction <add>, %271, %cst_108 [1] : vector<8x32xf32> to vector<8xf32>
    %275 = vector.shape_cast %274 : vector<8xf32> to vector<8x1xf32>
    %cst_109 = arith.constant 3.200000e+01 : f32
    %276 = vector.broadcast %cst_109 : f32 to vector<8x1xf32>
    %277 = arith.divf %275, %276 : vector<8x1xf32>
    %278 = vector.broadcast %277 : vector<8x1xf32> to vector<8x32xf32>
    %279 = arith.subf %271, %278 : vector<8x32xf32>
    %280 = arith.mulf %279, %279 : vector<8x32xf32>
    %cst_110 = arith.constant dense<0.000000e+00> : vector<8xf32>
    %281 = vector.multi_reduction <add>, %280, %cst_110 [1] : vector<8x32xf32> to vector<8xf32>
    %282 = vector.shape_cast %281 : vector<8xf32> to vector<8x1xf32>
    %cst_111 = arith.constant 3.200000e+01 : f32
    %283 = vector.broadcast %cst_111 : f32 to vector<8x1xf32>
    %284 = arith.divf %282, %283 : vector<8x1xf32>
    %285 = vector.broadcast %277 : vector<8x1xf32> to vector<8x32xf32>
    %286 = arith.subf %271, %285 : vector<8x32xf32>
    %cst_112 = arith.constant 9.99999974E-6 : f32
    %287 = vector.broadcast %cst_112 : f32 to vector<8x1xf32>
    %288 = arith.addf %284, %287 : vector<8x1xf32>
    %289 = math.rsqrt %288 : vector<8x1xf32>
    %290 = vector.broadcast %289 : vector<8x1xf32> to vector<8x32xf32>
    %291 = arith.mulf %286, %290 : vector<8x32xf32>
    %292 = vector.broadcast %272 : vector<1x32xf32> to vector<8x32xf32>
    %293 = arith.mulf %291, %292 : vector<8x32xf32>
    %294 = vector.broadcast %273 : vector<1x32xf32> to vector<8x32xf32>
    %295 = arith.addf %293, %294 : vector<8x32xf32>
    %296 = vector.shape_cast %295 : vector<8x32xf32> to vector<1x8x32xf32>
    %c0_113 = arith.constant 0 : index
    %c0_114 = arith.constant 0 : index
    %c0_115 = arith.constant 0 : index
    %297 = vector.load %arg22[%c0_113, %c0_114, %c0_115] : memref<1x8x32xf32, #tpu.memory_space<vmem>>, vector<1x8x32xf32>
    tpu.vector_store %arg22[%c0_113, %c0_114, %c0_115], %296 {strides = array<i32>} : memref<1x8x32xf32, #tpu.memory_space<vmem>>, vector<1x8x32xf32>,
    return
  }
  func.func @transform_0(%arg0: i32) -> (i32, i32, i32) {
    %c0_i32 = arith.constant 0 : i32
    %c0_i32_0 = arith.constant 0 : i32
    %c0_i32_1 = arith.constant 0 : i32
    return %arg0, %c0_i32, %c0_i32_0 : i32, i32, i32
  }
  func.func @transform_1(%arg0: i32) -> (i32, i32, i32) {
    %c0_i32 = arith.constant 0 : i32
    %c0_i32_0 = arith.constant 0 : i32
    %c0_i32_1 = arith.constant 0 : i32
    return %arg0, %c0_i32, %c0_i32_0 : i32, i32, i32
  }
  func.func @transform_2(%arg0: i32) -> (i32, i32, i32) {
    %c0_i32 = arith.constant 0 : i32
    %c0_i32_0 = arith.constant 0 : i32
    %c0_i32_1 = arith.constant 0 : i32
    return %arg0, %c0_i32, %c0_i32_0 : i32, i32, i32
  }
  func.func @transform_3(%arg0: i32) -> (i32, i32) {
    %c0_i32 = arith.constant 0 : i32
    %c0_i32_0 = arith.constant 0 : i32
    %c0_i32_1 = arith.constant 0 : i32
    return %c0_i32, %c0_i32_0 : i32, i32
  }
  func.func @transform_4(%arg0: i32) -> (i32, i32) {
    %c0_i32 = arith.constant 0 : i32
    %c0_i32_0 = arith.constant 0 : i32
    %c0_i32_1 = arith.constant 0 : i32
    return %c0_i32, %c0_i32_0 : i32, i32
  }
  func.func @transform_5(%arg0: i32) -> (i32, i32) {
    %c0_i32 = arith.constant 0 : i32
    %c0_i32_0 = arith.constant 0 : i32
    %c0_i32_1 = arith.constant 0 : i32
    return %c0_i32, %c0_i32_0 : i32, i32
  }
  func.func @transform_6(%arg0: i32) -> (i32, i32) {
    %c0_i32 = arith.constant 0 : i32
    %c0_i32_0 = arith.constant 0 : i32
    %c0_i32_1 = arith.constant 0 : i32
    return %c0_i32, %c0_i32_0 : i32, i32
  }
  func.func @transform_7(%arg0: i32) -> (i32, i32) {
    %c0_i32 = arith.constant 0 : i32
    %c0_i32_0 = arith.constant 0 : i32
    %c0_i32_1 = arith.constant 0 : i32
    return %c0_i32, %c0_i32_0 : i32, i32
  }
  func.func @transform_8(%arg0: i32) -> (i32, i32) {
    %c0_i32 = arith.constant 0 : i32
    %c0_i32_0 = arith.constant 0 : i32
    %c0_i32_1 = arith.constant 0 : i32
    return %c0_i32, %c0_i32_0 : i32, i32
  }
  func.func @transform_9(%arg0: i32) -> (i32, i32) {
    %c0_i32 = arith.constant 0 : i32
    %c0_i32_0 = arith.constant 0 : i32
    %c0_i32_1 = arith.constant 0 : i32
    return %c0_i32, %c0_i32_0 : i32, i32
  }
  func.func @transform_10(%arg0: i32) -> (i32, i32) {
    %c0_i32 = arith.constant 0 : i32
    %c0_i32_0 = arith.constant 0 : i32
    %c0_i32_1 = arith.constant 0 : i32
    return %c0_i32, %c0_i32_0 : i32, i32
  }
  func.func @transform_11(%arg0: i32) -> (i32, i32) {
    %c0_i32 = arith.constant 0 : i32
    %c0_i32_0 = arith.constant 0 : i32
    %c0_i32_1 = arith.constant 0 : i32
    return %c0_i32, %c0_i32_0 : i32, i32
  }
  func.func @transform_12(%arg0: i32) -> (i32, i32) {
    %c0_i32 = arith.constant 0 : i32
    %c0_i32_0 = arith.constant 0 : i32
    %c0_i32_1 = arith.constant 0 : i32
    return %c0_i32, %c0_i32_0 : i32, i32
  }
  func.func @transform_13(%arg0: i32) -> (i32, i32) {
    %c0_i32 = arith.constant 0 : i32
    %c0_i32_0 = arith.constant 0 : i32
    %c0_i32_1 = arith.constant 0 : i32
    return %c0_i32, %c0_i32_0 : i32, i32
  }
  func.func @transform_14(%arg0: i32) -> (i32, i32) {
    %c0_i32 = arith.constant 0 : i32
    %c0_i32_0 = arith.constant 0 : i32
    %c0_i32_1 = arith.constant 0 : i32
    return %c0_i32, %c0_i32_0 : i32, i32
  }
  func.func @transform_15(%arg0: i32) -> (i32, i32) {
    %c0_i32 = arith.constant 0 : i32
    %c0_i32_0 = arith.constant 0 : i32
    %c0_i32_1 = arith.constant 0 : i32
    return %c0_i32, %c0_i32_0 : i32, i32
  }
  func.func @transform_16(%arg0: i32) -> (i32, i32) {
    %c0_i32 = arith.constant 0 : i32
    %c0_i32_0 = arith.constant 0 : i32
    %c0_i32_1 = arith.constant 0 : i32
    return %c0_i32, %c0_i32_0 : i32, i32
  }
  func.func @transform_17(%arg0: i32) -> (i32, i32) {
    %c0_i32 = arith.constant 0 : i32
    %c0_i32_0 = arith.constant 0 : i32
    %c0_i32_1 = arith.constant 0 : i32
    return %c0_i32, %c0_i32_0 : i32, i32
  }
  func.func @transform_18(%arg0: i32) -> (i32, i32) {
    %c0_i32 = arith.constant 0 : i32
    %c0_i32_0 = arith.constant 0 : i32
    %c0_i32_1 = arith.constant 0 : i32
    return %c0_i32, %c0_i32_0 : i32, i32
  }
  func.func @transform_19(%arg0: i32) -> (i32, i32) {
    %c0_i32 = arith.constant 0 : i32
    %c0_i32_0 = arith.constant 0 : i32
    %c0_i32_1 = arith.constant 0 : i32
    return %c0_i32, %c0_i32_0 : i32, i32
  }
  func.func @transform_20(%arg0: i32) -> (i32, i32) {
    %c0_i32 = arith.constant 0 : i32
    %c0_i32_0 = arith.constant 0 : i32
    %c0_i32_1 = arith.constant 0 : i32
    return %c0_i32, %c0_i32_0 : i32, i32
  }
  func.func @transform_21(%arg0: i32) -> (i32, i32, i32) {
    %c0_i32 = arith.constant 0 : i32
    %c0_i32_0 = arith.constant 0 : i32
    %c0_i32_1 = arith.constant 0 : i32
    return %arg0, %c0_i32, %c0_i32_0 : i32, i32, i32
  }
}

</mosaic_0001>

<bundles_post_ra>
// kernel: tpu_custom_call.1
= control target key start
LH: loop header
LB: loop body
LE: loop exit
PB: predicated region body
PF: predicated region fallthrough
CT: control target
= control target key end

     0   :  { %s5346_s0 = inlined_call_operand.hbm [shape: f32[2,8,32], index: 0, kind: input, shape index: {}]   ;;  %s5347_s1 = inlined_call_operand.hbm [shape: f32[2,8,32], index: 1, kind: input, shape index: {}]   ;;  %s5348_s2 = inlined_call_operand.hbm [shape: f32[2,1,8], index: 2, kind: input, shape index: {}]   ;;  %s5349_s3 = inlined_call_operand.vmem [shape: f32[32,32], index: 3, kind: input, shape index: {}]   ;;  %s5350_s4 = inlined_call_operand.vmem [shape: f32[32,32], index: 4, kind: input, shape index: {}]   ;;  %s5351_s5 = inlined_call_operand.vmem [shape: f32[32,32], index: 5, kind: input, shape index: {}]   ;;  %s5352_s6 = inlined_call_operand.hbm [shape: f32[32,32], index: 6, kind: input, shape index: {}]   ;;  %s5353_s7 = inlined_call_operand.hbm [shape: f32[1,32], index: 7, kind: input, shape index: {}]   ;;  %s5354_s8 = inlined_call_operand.hbm [shape: f32[1,32], index: 8, kind: input, shape index: {}]   ;;  %s5355_s9 = inlined_call_operand.vmem [shape: f32[32,32], index: 9, kind: input, shape index: {}]   ;;  %s5356_s10 = inlined_call_operand.hbm [shape: f32[32,32], index: 10, kind: input, shape index: {}]   ;;  %s5357_s11 = inlined_call_operand.hbm [shape: f32[32,32], index: 11, kind: input, shape index: {}]   ;;  %s5358_s12 = inlined_call_operand.hbm [shape: f32[32,32], index: 12, kind: input, shape index: {}]   ;;  %s5359_s13 = inlined_call_operand.hbm [shape: f32[1,32], index: 13, kind: input, shape index: {}]   ;;  %s5360_s14 = inlined_call_operand.hbm [shape: f32[1,32], index: 14, kind: input, shape index: {}]   ;;  %s5361_s15 = inlined_call_operand.hbm [shape: f32[32,64], index: 15, kind: input, shape index: {}]   ;;  %s5362_s16 = inlined_call_operand.hbm [shape: f32[1,64], index: 16, kind: input, shape index: {}]   ;;  %s5363_s17 = inlined_call_operand.vmem [shape: f32[64,32], index: 17, kind: input, shape index: {}]   ;;  %s5364_s18 = inlined_call_operand.vmem [shape: f32[1,32], index: 18, kind: input, shape index: {}]   ;;  %s5365_s19 = inlined_call_operand.vmem [shape: f32[1,32], index: 19, kind: input, shape index: {}]   ;;  %s5366_s20 = inlined_call_operand.vmem [shape: f32[1,32], index: 20, kind: input, shape index: {}]   ;;  %s5367_s21 = inlined_call_operand.hbm [shape: f32[2,8,32], index: 21, kind: output, shape index: {}]  }
   0x1   :  { %5402 = sst [smem:[#allocation37_spill]] %s5346_s0 }
   0x2   :  { %5403 = sst [smem:[#allocation38_spill]] %s5347_s1 }
   0x3   :  { %5404 = sst [smem:[#allocation39_spill]] %s5348_s2 }
   0x4   :  { %5405 = sst [smem:[#allocation40_spill]] %s5349_s3 }
   0x5   :  { %5406 = sst [smem:[#allocation41_spill]] %s5350_s4 }
   0x6   :  { %5407 = sst [smem:[#allocation42_spill]] %s5351_s5 }
   0x7   :  { %5408 = sst [smem:[#allocation43_spill]] %s5352_s6 }
   0x8   :  { %5409 = sst [smem:[#allocation44_spill]] %s5353_s7 }
   0x9   :  { %5410 = sst [smem:[#allocation45_spill]] %s5354_s8 }
   0xa   :  { %5411 = sst [smem:[#allocation46_spill]] %s5355_s9 }
   0xb   :  { %5412 = sst [smem:[#allocation47_spill]] %s5357_s11 }
   0xc   :  { %5413 = sst [smem:[#allocation48_spill]] %s5359_s13 }
   0xd   :  { %5414 = sst [smem:[#allocation49_spill]] %s5361_s15 }
   0xe   :  { %5415 = sst [smem:[#allocation50_spill]] %s5363_s17 }
   0xf   :  { %5416 = sst [smem:[#allocation51_spill]] %s5364_s18 }
  0x10   :  { %5417 = sst [smem:[#allocation52_spill]] %s5365_s19 }
  0x11   :  { %5418 = sst [smem:[#allocation53_spill]] %s5366_s20 }
  0x12   :  { %5419 = sst [smem:[#allocation54_spill]] %s5367_s21 }
  0x13   :  { %26 = vsyncpa [#allocation3], 0 }
  0x14   :  { %28 = vsyncpa [#allocation3 + $0x1], 0 }
  0x15   :  { %29 = vsyncpa [#allocation6], 0 }
  0x16   :  { %31 = vsyncpa [#allocation6 + $0x1], 0 }
  0x17   :  { %32 = vsyncpa [#allocation9], 0 }
  0x18   :  { %33 = vsyncpa [#allocation12], 0 }
  0x19   :  { %34 = vsyncpa [#allocation15], 0 }
  0x1a   :  { %35 = vsyncpa [#allocation18], 0 }
  0x1b   :  { %36 = vsyncpa [#allocation21], 0 }
  0x1c   :  { %37 = vsyncpa [#allocation4], 0 }
  0x1d   :  { %39 = vsyncpa [#allocation4 + $0x1], 0  ;;  %s4588_s2 = smov 0   ;;  %s4590_s25 = smov 0  }
  0x1e   :  { %s4592_s26 = smov 0   ;;  %s4594_s27 = smov 0  }
  0x1f LB: > { %5420 = sst [smem:[#allocation32_spill]] %s4446_s26  ;;  %s4452_s3 = smov [#allocation8]   ;;  %s4450_s27 = sphi %s4594_s27, %s5479_s27   ;;  %s4446_s26 = sphi %s4592_s26, %s5481_s26   ;;  %s4442_s25 = sphi %s4590_s25, %s5483_s25   ;;  %s4438_s2 = sphi %s4588_s2, %s5482_s2  }
  0x20   : > { %s553_s28 = sshll.u32 %s4452_s3, 4  ;;  %s4609_s29 = sadd.s32 4294967295, %s4450_s27   ;;  %s4614_s28 = int_to_ptr.vmem [resolvable:$true] %s553_s28 }
  0x21   : > { %p3355_p0 = scmp.ge.s32.totalorder %s4450_s27, 1  ;;  %p5378_p1 = scmp.eq.s32.totalorder %s4609_s29, 0 }
  0x22   : > { %p532_p2 = scmp.lt.s32.totalorder %s4450_s27, 3  ;;  %s4453_s4 = smov [#allocation11]  }
  0x23   : > { %s578_s30 = sshll.u32 %s4453_s4, 4  ;;  %s4454_s22 = smov [#allocation14]   ;;  %s4629_s30 = int_to_ptr.vmem [resolvable:$true] %s578_s30 }
  0x24   : > { %p4616_p3 = pnand %p3355_p0, %p532_p2  ;;  %s604_s23 = sshll.u32 %s4454_s22, 4  ;;  %s4631_s23 = int_to_ptr.vmem [resolvable:$true] %s604_s23 }
  0x25   : > { %s5424_s6 = sld [smem:[#allocation43_spill]] }
  0x26   : > { %s5421_s0 = scalar_select %p4616_p3, 1, 0 }
  0x27   : > { %p3831_p5 = pneg %p4616_p3 }
  0x28   : > { %5422 = sst [smem:[#allocation33_spill]] %s5421_s0 }
  0x29   : > { %p4625_p6 = pnand %p3831_p5, %p5378_p1 }
  0x2b   : > { %s5423_s5 = scalar_select %p4625_p6, 1, 0 }
  0x2c   : > { %s3990_s3 = scalar_lea.hbm %s5424_s6, 512  ;;  %p4641_p8 = pneg %p4625_p6 }
  0x2d   : > { %p3991_p7 = scmp.ne.s32.totalorder %s5424_s6, %s3990_s3  ;;  %p3997_p11 = scmp.lt.u32.totalorder %s3990_s3, %s5424_s6 }
  0x2e   : > { %s5425_s4 = scalar_select %p4641_p8, 1, 0 }
  0x2f   : > { %p3993_p9 = pnand %p4641_p8, %p3991_p7 }
  0x31   : > { %p3994_p10 = pneg %p3993_p9 }
  0x33   : > { %p3999_p12 = pnand %p3997_p11, %p3994_p10 }
  0x35   : > { %4002 = shalt.err (!%p3999_p12)
}
  0x36   : > { %s4003_s20 = scalar_lea.vmem %s4614_s28, 512  ;;  %p4011_p5 = scmp.lt.s32.totalorder %s4614_s28, %s4614_s28 }
  0x37   : > { %p4004_p13 = scmp.ne.s32.totalorder %s4614_s28, %s4003_s20  ;;  %p4012_p4 = scmp.lt.s32.totalorder %s4003_s20, %s4003_s20 }
  0x39   : > { %p4006_p0 = pnand %p4004_p13, %p4641_p8  ;;  %p4013_p7 = por %p4012_p4, %p4011_p5 }
  0x3b   : > { %p4007_p2 = pneg %p4006_p0 }
  0x3d   : > { %p4014_p9 = pnand %p4013_p7, %p4007_p2 }
  0x3f   : > { %4017 = shalt.err (!%p4014_p9)
}
  0x40   : > { %s5380_s21 = smov 128   ;;  %s5382_s19 = smov 8  }
  0x41   : > { %3834 = dma.hbm_to_vmem [thread:$0]  (!%p4625_p6), %s5424_s6, 512, %s4614_s28, [#allocation9], %s5380_s21, %s5380_s21, %s5382_s19  }
  0x42   : > { %s5426_s8 = sld [smem:[#allocation45_spill]] }
  0x48   : > { %s4018_s20 = scalar_lea.hbm %s5426_s8, 16 }
  0x49   : > { %p4019_p4 = scmp.ne.s32.totalorder %s5426_s8, %s4018_s20  ;;  %p4025_p12 = scmp.lt.u32.totalorder %s4018_s20, %s5426_s8 }
  0x4b   : > { %p4021_p10 = pnand %p4019_p4, %p4641_p8 }
  0x4d   : > { %p4022_p11 = pneg %p4021_p10 }
  0x4f   : > { %p4027_p13 = pnand %p4025_p12, %p4022_p11 }
  0x51   : > { %4030 = shalt.err (!%p4027_p13)
}
  0x52   : > { %s4031_s28 = scalar_lea.vmem %s4629_s30, 16  ;;  %s4038_s17 = scalar_lea.vmem %s4629_s30, 32 }
  0x53   : > { %p4032_p0 = scmp.ne.s32.totalorder %s4629_s30, %s4031_s28  ;;  %p4039_p7 = scmp.lt.s32.totalorder %s4629_s30, %s4629_s30 }
  0x54   : > { %p4040_p9 = scmp.lt.s32.totalorder %s4038_s17, %s4031_s28 }
  0x55   : > { %p4034_p2 = pnand %p4032_p0, %p4641_p8 }
  0x56   : > { %p4041_p4 = por %p4040_p9, %p4039_p7 }
  0x57   : > { %p4035_p5 = pneg %p4034_p2 }
  0x59   : > { %p4042_p10 = pnand %p4041_p4, %p4035_p5 }
  0x5b   : > { %4045 = shalt.err (!%p4042_p10)
}
  0x5c   : > { %3840 = dma.hbm_to_vmem [thread:$0]  (!%p4625_p6), %s5426_s8, 16, %s4629_s30, [#allocation12]  }
  0x5d   : > { %s5427_s11 = sld [smem:[#allocation47_spill]] }
  0x63   : > { %s4046_s24 = scalar_lea.hbm %s5427_s11, 512 }
  0x64   : > { %p4047_p11 = scmp.ne.s32.totalorder %s5427_s11, %s4046_s24  ;;  %p4053_p0 = scmp.lt.u32.totalorder %s4046_s24, %s5427_s11 }
  0x66   : > { %p4049_p12 = pnand %p4047_p11, %p4641_p8 }
  0x68   : > { %p4050_p13 = pneg %p4049_p12 }
  0x6a   : > { %p4055_p2 = pnand %p4053_p0, %p4050_p13 }
  0x6c   : > { %4058 = shalt.err (!%p4055_p2)
}
  0x6d   : > { %s4059_s30 = scalar_lea.vmem %s4631_s23, 512  ;;  %p4067_p4 = scmp.lt.s32.totalorder %s4631_s23, %s4631_s23 }
  0x6e   : > { %p4060_p5 = scmp.ne.s32.totalorder %s4631_s23, %s4059_s30  ;;  %p4068_p10 = scmp.lt.s32.totalorder %s4059_s30, %s4059_s30 }
  0x70   : > { %p4062_p7 = pnand %p4060_p5, %p4641_p8  ;;  %p4069_p11 = por %p4068_p10, %p4067_p4 }
  0x72   : > { %p4063_p9 = pneg %p4062_p7 }
  0x74   : > { %p4070_p12 = pnand %p4069_p11, %p4063_p9 }
  0x76   : > { %4073 = shalt.err (!%p4070_p12)
}
  0x77   : > { %3846 = dma.hbm_to_vmem [thread:$0]  (!%p4625_p6), %s5427_s11, 512, %s4631_s23, [#allocation15], %s5380_s21, %s5380_s21, %s5382_s19  }
  0x78   : > { %s4457_s18 = smov [#allocation17]   ;;  %s4458_s1 = smov [#allocation20]  }
  0x79   : > { %s631_s0 = sshll.u32 %s4457_s18, 4  ;;  %s652_s24 = sshll.u32 %s4458_s1, 4  ;;  %s632_s0 = int_to_ptr.vmem [resolvable:$true] %s631_s0  ;;  %s653_s24 = int_to_ptr.vmem [resolvable:$true] %s652_s24 }
  0x7a   : > { %s5428_s13 = sld [smem:[#allocation48_spill]] }
  0x80   : > { %s4074_s20 = scalar_lea.hbm %s5428_s13, 16 }
  0x81   : > { %p4075_p13 = scmp.ne.s32.totalorder %s5428_s13, %s4074_s20  ;;  %p4081_p5 = scmp.lt.u32.totalorder %s4074_s20, %s5428_s13 }
  0x83   : > { %p4077_p0 = pnand %p4075_p13, %p4641_p8 }
  0x85   : > { %p4078_p2 = pneg %p4077_p0 }
  0x87   : > { %p4083_p7 = pnand %p4081_p5, %p4078_p2 }
  0x89   : > { %4086 = shalt.err (!%p4083_p7)
}
  0x8a   : > { %s4087_s23 = scalar_lea.vmem %s632_s0, 16  ;;  %s4094_s9 = scalar_lea.vmem %s632_s0, 32 }
  0x8b   : > { %p4088_p9 = scmp.ne.s32.totalorder %s632_s0, %s4087_s23  ;;  %p4095_p11 = scmp.lt.s32.totalorder %s632_s0, %s632_s0 }
  0x8c   : > { %p4096_p12 = scmp.lt.s32.totalorder %s4094_s9, %s4087_s23 }
  0x8d   : > { %p4090_p4 = pnand %p4088_p9, %p4641_p8 }
  0x8e   : > { %p4097_p1 = por %p4096_p12, %p4095_p11 }
  0x8f   : > { %p4091_p10 = pneg %p4090_p4 }
  0x91   : > { %p4098_p3 = pnand %p4097_p1, %p4091_p10 }
  0x93   : > { %4101 = shalt.err (!%p4098_p3)
}
  0x94   : > { %3852 = dma.hbm_to_vmem [thread:$0]  (!%p4625_p6), %s5428_s13, 16, %s632_s0, [#allocation18]  }
  0x95   : > { %s5429_s15 = sld [smem:[#allocation49_spill]] }
  0x9b   : > { %s4102_s22 = scalar_lea.hbm %s5429_s15, 512 }
  0x9c   : > { %p4103_p13 = scmp.ne.s32.totalorder %s5429_s15, %s4102_s22  ;;  %p4109_p3 = scmp.lt.u32.totalorder %s4102_s22, %s5429_s15 }
  0x9e   : > { %p4105_p0 = pnand %p4103_p13, %p4641_p8 }
  0xa0   : > { %p4106_p1 = pneg %p4105_p0 }
  0xa2   : > { %p4111_p2 = pnand %p4109_p3, %p4106_p1 }
  0xa4   : > { %4114 = shalt.err (!%p4111_p2)
}
  0xa5   : > { %s4115_s23 = scalar_lea.vmem %s653_s24, 512  ;;  %p4123_p4 = scmp.lt.s32.totalorder %s653_s24, %s653_s24 }
  0xa6   : > { %p4116_p5 = scmp.ne.s32.totalorder %s653_s24, %s4115_s23  ;;  %p4124_p10 = scmp.lt.s32.totalorder %s4115_s23, %s4115_s23 }
  0xa8   : > { %p4118_p7 = pnand %p4116_p5, %p4641_p8  ;;  %p4125_p11 = por %p4124_p10, %p4123_p4 }
  0xaa   : > { %p4119_p9 = pneg %p4118_p7 }
  0xac   : > { %p4126_p12 = pnand %p4125_p11, %p4119_p9 }
  0xae   : > { %4129 = shalt.err (!%p4126_p12)
}
  0xaf   : > { %3858 = dma.hbm_to_vmem [thread:$0]  (!%p4625_p6), %s5429_s15, 512, %s653_s24, [#allocation21], %s5380_s21, %s5380_s21, %s5382_s19  }
  0xb0   : > { %s3354_s18 = sadd.s32 4294967294, %s4450_s27   ;;  %s4756_s1 = sadd.s32 1, %s4450_s27  }
  0xb1   : > { %5430 = sst [smem:[#allocation34_spill]] %s4756_s1  ;;  %s52_s6 = sadd.s32 1, %s4446_s26 }
  0xb2   : > { %s49_s3 = ssub.s32 %s4450_s27, %s4756_s1  ;;  %p59_p13 = scmp.ne.s32.totalorder %s4446_s26, %s4442_s25 }
  0xb3   : > { %p50_p0 = scmp.eq.s32.totalorder %s49_s3, 0  ;;  %p60_p1 = scmp.eq.s32.totalorder %s4450_s27, 0 }
  0xb4   : > { %p65_p3 = scmp.ne.s32.totalorder %s4442_s25, %s4438_s2  ;;  %p519_p2 = scmp.eq.s32.totalorder %s4609_s29, 1 }
  0xb5   : > { %s4768_s22 = scalar_select %p50_p0, %s4446_s26, %s52_s6  }
  0xb6   : > { %p61_p5 = por %p60_p1, %p59_p13  ;;  %p5432_p7 = scmp.eq.s32.totalorder %s4609_s29, 0 }
  0xb7   : > { %5431 = sst [smem:[#allocation35_spill]] %s4768_s22  ;;  %p4776_p4 = por %p519_p2, %p59_p13 }
  0xb8   : > { %p4772_p9 = por %p5432_p7, %p65_p3  ;;  %p525_p10 = scmp.eq.s32.totalorder %s3354_s18, 1 }
  0xb9   : > { %s5434_s20 = scalar_select %p4776_p4, 1, 0 }
  0xba   : > { %s5433_s24 = scalar_select %p4772_p9, 1, 0 }
  0xbb   : > { %p3886_p11 = scmp.lt.s32.totalorder %s4450_s27, 2  ;;  %s4782_s28 = sand.u32 1, %s4446_s26  }
  0xbc   : > { %p4784_p12 = por %p525_p10, %p65_p3  ;;  %s5384_s17 = sshll.u32 %s4782_s28, 3 }
  0xbd   : > { %s5385_s23 = sshll.u32 %s4450_s27, 7  ;;  %p4790_p0 = pnand %p3886_p11, %p61_p5 }
  0xbe   : > { %s5435_s30 = scalar_select %p4784_p12, 1, 0 }
  0xbf   : > { %s5437_s0 = scalar_select %p4790_p0, 1, 0 }
  0xc0   : > { %5436 = sst [smem:[#allocation36_spill]] %s5435_s30  ;;  %s707_s9 = sand.u32 1, %s4450_s27  }
  0xc1   : > { %s5438_s3 = sld [smem:[#allocation38_spill]]  ;;  %s711_s19 = scalar_lea.vmem [#allocation5], %s5384_s17 }
  0xc2   : > { %s718_s8 = sshll.u32 %s711_s19, 4  ;;  %s4806_s11 = scalar_lea.sflag [#allocation6], %s707_s9  ;;  %s4804_s8 = int_to_ptr.vmem [resolvable:$true] %s718_s8 }
  0xc3   : > { %p4812_p1 = pneg %p4790_p0 }
  0xc5   : > { %s5439_s15 = scalar_select %p4812_p1, 1, 0 }
  0xc7   : > { %s4800_s21 = scalar_lea.hbm %s5438_s3, %s5385_s23  ;;  %s4135_s17 = scalar_lea.hbm %s5438_s3, 256 }
  0xc8   : > { %s4130_s13 = scalar_lea.hbm %s4800_s21, 128  ;;  %p4136_p5 = scmp.lt.u32.totalorder %s4800_s21, %s5438_s3 }
  0xc9   : > { %p4131_p13 = scmp.ne.s32.totalorder %s4800_s21, %s4130_s13  ;;  %p4137_p7 = scmp.lt.u32.totalorder %s4135_s17, %s4130_s13 }
  0xca   : > { %p4139_p11 = scmp.lt.u32.totalorder %s4130_s13, %s4800_s21 }
  0xcb   : > { %p4133_p3 = pnand %p4812_p1, %p4131_p13  ;;  %p4138_p10 = por %p4137_p7, %p4136_p5 }
  0xcd   : > { %p4134_p2 = pneg %p4133_p3  ;;  %p4140_p12 = por %p4139_p11, %p4138_p10 }
  0xcf   : > { %p4141_p4 = pnand %p4140_p12, %p4134_p2 }
  0xd1   : > { %4144 = shalt.err (!%p4141_p4)
}
  0xd2   : > { %s4145_s9 = scalar_lea.vmem %s4804_s8, 128  ;;  %s4459_s6 = smov [#allocation5]  }
  0xd3   : > { %p4146_p13 = scmp.ne.s32.totalorder %s4804_s8, %s4145_s9  ;;  %s4150_s18 = sshll.u32 %s4459_s6, 4  ;;  %s4151_s18 = int_to_ptr.vmem [resolvable:$false] %s4150_s18 }
  0xd4   : > { %s4152_s23 = scalar_lea.vmem %s4151_s18, 256  ;;  %p4153_p6 = scmp.lt.s32.totalorder %s4804_s8, %s4151_s18 }
  0xd5   : > { %p4148_p3 = pnand %p4146_p13, %p4812_p1  ;;  %p4154_p8 = scmp.lt.s32.totalorder %s4152_s23, %s4145_s9 }
  0xd7   : > { %p4149_p9 = pneg %p4148_p3  ;;  %p4155_p5 = por %p4154_p8, %p4153_p6 }
  0xd9   : > { %p4156_p7 = pnand %p4155_p5, %p4149_p9 }
  0xdb   : > { %4159 = shalt.err (!%p4156_p7)
}
  0xdc   : > { %3868 = dma.hbm_to_vmem [thread:$0]  (!%p4790_p0), %s4800_s21, 128, %s4804_s8, %s4806_s11  }
  0xdd   : > { %s4460_s13 = smov [#allocation10]   ;;  %s4461_s19 = smov [#allocation13]  }
  0xde   : > { %s567_s17 = sshll.u32 %s4460_s13, 4  ;;  %s591_s3 = sshll.u32 %s4461_s19, 4  ;;  %s568_s17 = int_to_ptr.vmem [resolvable:$true] %s567_s17  ;;  %s592_s3 = int_to_ptr.vmem [resolvable:$true] %s591_s3 }
  0xdf   : > { %s5440_s7 = sld [smem:[#allocation44_spill]]  ;;  %p5441_p8 = scmp.ne.s32.totalorder %s5425_s4, 0 }
  0xe5   : > { %s4160_s18 = scalar_lea.hbm %s5440_s7, 16 }
  0xe6   : > { %p4161_p6 = scmp.ne.s32.totalorder %s5440_s7, %s4160_s18  ;;  %p4167_p12 = scmp.lt.u32.totalorder %s4160_s18, %s5440_s7 }
  0xe8   : > { %p4163_p9 = pnand %p4161_p6, %p5441_p8 }
  0xea   : > { %p4164_p4 = pneg %p4163_p9 }
  0xec   : > { %p4169_p2 = pnand %p4167_p12, %p4164_p4 }
  0xee   : > { %4172 = shalt.err (!%p4169_p2)
}
  0xef   : > { %s4173_s8 = scalar_lea.vmem %s568_s17, 16  ;;  %s4180_s21 = scalar_lea.vmem %s568_s17, 32 }
  0xf0   : > { %p4174_p10 = scmp.ne.s32.totalorder %s568_s17, %s4173_s8  ;;  %p4181_p3 = scmp.lt.s32.totalorder %s568_s17, %s568_s17 }
  0xf1   : > { %p4182_p5 = scmp.lt.s32.totalorder %s4180_s21, %s4173_s8 }
  0xf2   : > { %p4176_p11 = pnand %p4174_p10, %p5441_p8 }
  0xf3   : > { %p4183_p7 = por %p4182_p5, %p4181_p3 }
  0xf4   : > { %p4177_p13 = pneg %p4176_p11 }
  0xf6   : > { %p4184_p0 = pnand %p4183_p7, %p4177_p13 }
  0xf8   : > { %4187 = shalt.err (!%p4184_p0)
}
  0xf9   : > { %p5442_p6 = scmp.ne.s32.totalorder %s5423_s5, 0  ;;  %s4188_s19 = scalar_lea.hbm %s5356_s10, 512 }
  0xfa   : > { %p4189_p9 = scmp.ne.s32.totalorder %s5356_s10, %s4188_s19  ;;  %p4195_p0 = scmp.lt.u32.totalorder %s4188_s19, %s5356_s10 }
  0xfb   : > { %3837 = dma.hbm_to_vmem [thread:$0]  (!%p5442_p6), %s5440_s7, 16, %s568_s17, [#allocation9]  }
  0xfc   : > { %p4191_p4 = pnand %p4189_p9, %p5441_p8 }
  0xfe   : > { %p4192_p12 = pneg %p4191_p4 }
 0x100   : > { %p4197_p2 = pnand %p4195_p0, %p4192_p12 }
 0x102   : > { %4200 = shalt.err (!%p4197_p2)
}
 0x103   : > { %s4201_s8 = scalar_lea.vmem %s592_s3, 512  ;;  %p4209_p3 = scmp.lt.s32.totalorder %s592_s3, %s592_s3 }
 0x104   : > { %p4202_p10 = scmp.ne.s32.totalorder %s592_s3, %s4201_s8  ;;  %p4210_p5 = scmp.lt.s32.totalorder %s4201_s8, %s4201_s8 }
 0x106   : > { %p4204_p11 = pnand %p4202_p10, %p5441_p8  ;;  %p4211_p7 = por %p4210_p5, %p4209_p3 }
 0x108   : > { %p4205_p13 = pneg %p4204_p11 }
 0x10a   : > { %p4212_p1 = pnand %p4211_p7, %p4205_p13 }
 0x10c   : > { %4215 = shalt.err (!%p4212_p1)
}
 0x10d   : > { %s5443_s17 = smov 8   ;;  %s5444_s21 = smov 128  }
 0x10e   : > { %3843 = dma.hbm_to_vmem [thread:$0]  (!%p5442_p6), %s5356_s10, 512, %s592_s3, [#allocation12], %s5444_s21, %s5444_s21, %s5443_s17  }
 0x10f   : > { %s4462_s26 = smov [#allocation16]   ;;  %s4463_s19 = smov [#allocation19]  }
 0x110   : > { %s617_s1 = sshll.u32 %s4462_s26, 4  ;;  %s642_s6 = sshll.u32 %s4463_s19, 4  ;;  %s618_s1 = int_to_ptr.vmem [resolvable:$true] %s617_s1  ;;  %s643_s6 = int_to_ptr.vmem [resolvable:$true] %s642_s6 }
 0x111   : > { %s4216_s23 = scalar_lea.hbm %s5358_s12, 512 }
 0x112   : > { %p4217_p1 = scmp.ne.s32.totalorder %s5358_s12, %s4216_s23  ;;  %p4223_p12 = scmp.lt.u32.totalorder %s4216_s23, %s5358_s12 }
 0x114   : > { %p4219_p9 = pnand %p4217_p1, %p5441_p8 }
 0x116   : > { %p4220_p4 = pneg %p4219_p9 }
 0x118   : > { %p4225_p0 = pnand %p4223_p12, %p4220_p4 }
 0x11a   : > { %4228 = shalt.err (!%p4225_p0)
}
 0x11b   : > { %s4229_s3 = scalar_lea.vmem %s618_s1, 512  ;;  %p4237_p13 = scmp.lt.s32.totalorder %s618_s1, %s618_s1 }
 0x11c   : > { %p4230_p2 = scmp.ne.s32.totalorder %s618_s1, %s4229_s3  ;;  %p4238_p3 = scmp.lt.s32.totalorder %s4229_s3, %s4229_s3 }
 0x11e   : > { %p4232_p10 = pnand %p4230_p2, %p5441_p8  ;;  %p4239_p5 = por %p4238_p3, %p4237_p13 }
 0x120   : > { %p4233_p11 = pneg %p4232_p10 }
 0x122   : > { %p4240_p7 = pnand %p4239_p5, %p4233_p11 }
 0x124   : > { %4243 = shalt.err (!%p4240_p7)
}
 0x125   : > { %3849 = dma.hbm_to_vmem [thread:$0]  (!%p5442_p6), %s5358_s12, 512, %s618_s1, [#allocation15], %s5444_s21, %s5444_s21, %s5443_s17  }
 0x126   : > { %s4244_s19 = scalar_lea.hbm %s5360_s14, 16 }
 0x127   : > { %p4245_p1 = scmp.ne.s32.totalorder %s5360_s14, %s4244_s19  ;;  %p4251_p12 = scmp.lt.u32.totalorder %s4244_s19, %s5360_s14 }
 0x129   : > { %p4247_p9 = pnand %p4245_p1, %p5441_p8 }
 0x12b   : > { %p4248_p4 = pneg %p4247_p9 }
 0x12d   : > { %p4253_p0 = pnand %p4251_p12, %p4248_p4 }
 0x12f   : > { %4256 = shalt.err (!%p4253_p0)
}
 0x130   : > { %s4257_s22 = scalar_lea.vmem %s643_s6, 16  ;;  %s4264_s17 = scalar_lea.vmem %s643_s6, 32 }
 0x131   : > { %p4258_p2 = scmp.ne.s32.totalorder %s643_s6, %s4257_s22  ;;  %p4265_p13 = scmp.lt.s32.totalorder %s643_s6, %s643_s6 }
 0x132   : > { %p4266_p3 = scmp.lt.s32.totalorder %s4264_s17, %s4257_s22 }
 0x133   : > { %p4260_p10 = pnand %p4258_p2, %p5441_p8 }
 0x134   : > { %p4267_p5 = por %p4266_p3, %p4265_p13 }
 0x135   : > { %p4261_p11 = pneg %p4260_p10 }
 0x137   : > { %p4268_p7 = pnand %p4267_p5, %p4261_p11 }
 0x139   : > { %4271 = shalt.err (!%p4268_p7)
}
 0x13a   : > { %3855 = dma.hbm_to_vmem [thread:$0]  (!%p5442_p6), %s5360_s14, 16, %s643_s6, [#allocation18]  }
 0x13b   : > { %s4464_s3 = smov [#allocation22]   ;;  %s4272_s26 = scalar_lea.hbm %s5362_s16, 16 }
 0x13c   : > { %s666_s7 = sshll.u32 %s4464_s3, 4  ;;  %p4273_p1 = scmp.ne.s32.totalorder %s5362_s16, %s4272_s26  ;;  %s667_s7 = int_to_ptr.vmem [resolvable:$true] %s666_s7 }
 0x13d   : > { %p4279_p12 = scmp.lt.u32.totalorder %s4272_s26, %s5362_s16 }
 0x13e   : > { %p4275_p9 = pnand %p4273_p1, %p5441_p8 }
 0x140   : > { %p4276_p4 = pneg %p4275_p9 }
 0x142   : > { %p4281_p0 = pnand %p4279_p12, %p4276_p4 }
 0x144   : > { %4284 = shalt.err (!%p4281_p0)
}
 0x145   : > { %s4285_s6 = scalar_lea.vmem %s667_s7, 16  ;;  %s4292_s8 = scalar_lea.vmem %s667_s7, 32 }
 0x146   : > { %p4286_p2 = scmp.ne.s32.totalorder %s667_s7, %s4285_s6  ;;  %p4293_p13 = scmp.lt.s32.totalorder %s667_s7, %s667_s7 }
 0x147   : > { %p4294_p3 = scmp.lt.s32.totalorder %s4292_s8, %s4285_s6 }
 0x148   : > { %p4288_p10 = pnand %p4286_p2, %p5441_p8 }
 0x149   : > { %p4295_p5 = por %p4294_p3, %p4293_p13 }
 0x14a   : > { %p4289_p11 = pneg %p4288_p10 }
 0x14c   : > { %p4296_p7 = pnand %p4295_p5, %p4289_p11 }
 0x14e   : > { %4299 = shalt.err (!%p4296_p7)
}
 0x14f   : > { %3861 = dma.hbm_to_vmem [thread:$0]  (!%p5442_p6), %s5362_s16, 16, %s667_s7, [#allocation21]  }
 0x150   : > { %s5445_s21 = sshll.u32 %s4450_s27, 7  ;;  %s5446_s3 = sld [smem:[#allocation37_spill]] }
 0x151   : > { %s5447_s13 = sshll.u32 %s4782_s28, 3  ;;  %s690_s19 = scalar_lea.sflag [#allocation3], %s4782_s28 }
 0x152   : > { %s693_s5 = scalar_lea.vmem [#allocation2], %s5447_s13  ;;  %p5448_p1 = scmp.ne.s32.totalorder %s5439_s15, 0 }
 0x153   : > { %s700_s26 = sshll.u32 %s693_s5, 4  ;;  %s701_s26 = int_to_ptr.vmem [resolvable:$true] %s700_s26 }
 0x156   : > { %s4937_s30 = scalar_lea.hbm %s5446_s3, %s5445_s21  ;;  %s4305_s23 = scalar_lea.hbm %s5446_s3, 256 }
 0x157   : > { %s4300_s18 = scalar_lea.hbm %s4937_s30, 128  ;;  %p4306_p4 = scmp.lt.u32.totalorder %s4937_s30, %s5446_s3 }
 0x158   : > { %p4301_p8 = scmp.ne.s32.totalorder %s4937_s30, %s4300_s18  ;;  %p4307_p12 = scmp.lt.u32.totalorder %s4305_s23, %s4300_s18 }
 0x159   : > { %p4309_p2 = scmp.lt.u32.totalorder %s4300_s18, %s4937_s30 }
 0x15a   : > { %p4303_p9 = pnand %p4301_p8, %p5448_p1  ;;  %p4308_p0 = por %p4307_p12, %p4306_p4 }
 0x15c   : > { %p4304_p6 = pneg %p4303_p9  ;;  %p4310_p10 = por %p4309_p2, %p4308_p0 }
 0x15e   : > { %p4311_p11 = pnand %p4310_p10, %p4304_p6 }
 0x160   : > { %4314 = shalt.err (!%p4311_p11)
}
 0x161   : > { %s4315_s22 = scalar_lea.vmem %s701_s26, 128  ;;  %s4465_s17 = smov [#allocation2]  }
 0x162   : > { %p4316_p13 = scmp.ne.s32.totalorder %s701_s26, %s4315_s22  ;;  %s4320_s21 = sshll.u32 %s4465_s17, 4  ;;  %s4321_s21 = int_to_ptr.vmem [resolvable:$false] %s4320_s21 }
 0x163   : > { %s4322_s4 = scalar_lea.vmem %s4321_s21, 256  ;;  %p4323_p7 = scmp.lt.s32.totalorder %s701_s26, %s4321_s21 }
 0x164   : > { %p4318_p3 = pnand %p4316_p13, %p5448_p1  ;;  %p4324_p8 = scmp.lt.s32.totalorder %s4322_s4, %s4315_s22 }
 0x166   : > { %p4319_p5 = pneg %p4318_p3  ;;  %p4325_p9 = por %p4324_p8, %p4323_p7 }
 0x168   : > { %p4326_p4 = pnand %p4325_p9, %p4319_p5 }
 0x16a   : > { %4329 = shalt.err (!%p4326_p4)
}
 0x16b   : > { %p5449_p12 = scmp.ne.s32.totalorder %s5437_s0, 0  ;;  %s3371_s1 = sshll.u32 %s4450_s27, 4 }
 0x16c   : > { %s728_s13 = scalar_lea.vmem [#allocation7], %s4782_s28  ;;  %s5450_s9 = sld [smem:[#allocation39_spill]] }
 0x16d   : > { %3865 = dma.hbm_to_vmem [thread:$0]  (!%p5449_p12), %s4937_s30, 128, %s701_s26, %s690_s19  }
 0x16e   : > { %s735_s5 = sshll.u32 %s728_s13, 4  ;;  %s736_s5 = int_to_ptr.vmem [resolvable:$true] %s735_s5 }
 0x172   : > { %s733_s23 = scalar_lea.hbm %s5450_s9, %s3371_s1  ;;  %s4335_s17 = scalar_lea.hbm %s5450_s9, 32 }
 0x173   : > { %s4330_s6 = scalar_lea.hbm %s733_s23, 16  ;;  %p4336_p10 = scmp.lt.u32.totalorder %s733_s23, %s5450_s9 }
 0x174   : > { %p4331_p6 = scmp.ne.s32.totalorder %s733_s23, %s4330_s6  ;;  %p4337_p11 = scmp.lt.u32.totalorder %s4335_s17, %s4330_s6 }
 0x175   : > { %p4339_p3 = scmp.lt.u32.totalorder %s4330_s6, %s733_s23 }
 0x176   : > { %p4333_p0 = pnand %p4331_p6, %p5448_p1  ;;  %p4338_p13 = por %p4337_p11, %p4336_p10 }
 0x178   : > { %p4334_p2 = pneg %p4333_p0  ;;  %p4340_p5 = por %p4339_p3, %p4338_p13 }
 0x17a   : > { %p4341_p7 = pnand %p4340_p5, %p4334_p2 }
 0x17c   : > { %4344 = shalt.err (!%p4341_p7)
}
 0x17d   : > { %s4345_s28 = scalar_lea.vmem %s736_s5, 16  ;;  %s4466_s30 = smov [#allocation7]  }
 0x17e   : > { %p4346_p8 = scmp.ne.s32.totalorder %s736_s5, %s4345_s28  ;;  %s4350_s26 = sshll.u32 %s4466_s30, 4  ;;  %s4351_s26 = int_to_ptr.vmem [resolvable:$false] %s4350_s26 }
 0x17f   : > { %s4352_s19 = scalar_lea.vmem %s4351_s26, 32  ;;  %p4353_p6 = scmp.lt.s32.totalorder %s736_s5, %s4351_s26 }
 0x180   : > { %p4348_p9 = pnand %p4346_p8, %p5448_p1  ;;  %p4354_p0 = scmp.lt.s32.totalorder %s4352_s19, %s4345_s28 }
 0x182   : > { %p4349_p4 = pneg %p4348_p9  ;;  %p4355_p12 = por %p4354_p0, %p4353_p6 }
 0x184   : > { %p4356_p10 = pnand %p4355_p12, %p4349_p4 }
 0x186   : > { %4359 = shalt.err (!%p4356_p10)
}
 0x187   : > { %p5451_p11 = scmp.ne.s32.totalorder %s5437_s0, 0  ;;  %s5452_s1 = sld [smem:[#allocation33_spill]] }
 0x189   : > { %3871 = dma.hbm_to_vmem [thread:$0]  (!%p5451_p11), %s733_s23, 16, %s736_s5, %s4806_s11  }
 0x18d   : > { %p5453_p2 = scmp.ne.s32.totalorder %s5452_s1, 0 }
 0x18e   : > { %s4980_s15 = sand.u32 (!%p5453_p2), 1, %s4442_s25   ;;  %p5454_p1 = scmp.ne.s32.totalorder (!%p5453_p2), %s5433_s24, 0 }
 0x18f   : > { %744 = sbr.rel (%p5453_p2) target bundleno = 4663 (0x1237), region = 104  ;;  %s4983_s13 = sshll.u32 (!%p5453_p2), %s4980_s15, 3 }
 0x190   : > { %s747_s18 = scalar_lea.sflag (!%p5453_p2), [#allocation3], %s4980_s15  ;;  %s750_s7 = scalar_lea.vmem (!%p5453_p2), [#allocation2], %s4983_s13 }
 0x196   : > { %4405 = dma.done.wait (%p5454_p1), %s747_s18, 128  }
 0x197   : > { %4407 = vsyncadd (%p5454_p1), %s747_s18, 4294967168  ;;  %s755_s11 = sand.u32 1, %s4609_s29   ;;  %s759_s5 = scalar_lea.vmem [#allocation5], %s4983_s13 }
 0x198   : > { %s756_s0 = scalar_lea.sflag [#allocation6], %s755_s11 }
 0x199   : > { %4409 = dma.done.wait (%p5454_p1), %s756_s0, 144  }
 0x19a   : > { %4411 = vsyncadd (%p5454_p1), %s756_s0, 4294967152  ;;  %s767_s23 = scalar_lea.vmem [#allocation7], %s4980_s15  ;;  %p5455_p12 = scmp.eq.s32.totalorder %s4609_s29, 0 }
 0x19c   : > { %4413 = dma.done.wait (%p5455_p12), [#allocation9], 528   ;;  %p5456_p13 = pmov %p5455_p12 }
 0x19d   : > { %p5457_p3 = pmov %p5455_p12 }
 0x19e   : > { %4415 = vsyncadd (%p5456_p13), [#allocation9], 4294966768 }
 0x19f   : > { %4417 = dma.done.wait (%p5457_p3), [#allocation12], 528   ;;  %p5458_p5 = pmov %p5457_p3 }
 0x1a0   : > { %p5459_p7 = pmov %p5457_p3 }
 0x1a1   : > { %4419 = vsyncadd (%p5458_p5), [#allocation12], 4294966768 }
 0x1a2   : > { %4421 = dma.done.wait (%p5459_p7), [#allocation15], 1024   ;;  %p5460_p8 = pmov %p5457_p3 }
 0x1a3   : > { %p5461_p9 = pmov %p5457_p3 }
 0x1a4   : > { %4423 = vsyncadd (%p5460_p8), [#allocation15], 4294966272 }
 0x1a5   : > { %4425 = dma.done.wait (%p5461_p9), [#allocation18], 32   ;;  %p5462_p4 = pmov %p5457_p3 }
 0x1a6   : > { %p5463_p6 = pmov %p5457_p3 }
 0x1a7   : > { %4427 = vsyncadd (%p5462_p4), [#allocation18], 4294967264 }
 0x1a8   : > { %4429 = dma.done.wait (%p5463_p6), [#allocation21], 528   ;;  %p5464_p0 = pmov %p5457_p3 }
 0x1a9   : > { %v4467_v0 = vmov 0.0|0.0   ;;  %vm4468_vm0 = vmmov 0   ;;  %v4469_v1 = vmov 0.0   ;;  %s5465_s8 = sld [smem:[#allocation40_spill]]  ;;  %s5466_s1 = sld [smem:[#allocation41_spill]]  ;;  %v5045_v10 = vld [vmem:[%s750_s7] sm:$0xff]  ;;  %v877_v34 = vlaneseq }
 0x1aa   : > { %4431 = vsyncadd (%p5464_p0), [#allocation21], 4294966768  ;;  %3717 = vmatprep.subr.bf16.mxu1 %v4467_v0  ;;  %3527 = vmatprep.mubr.msk.f32.mxu1 %vm4468_vm0, %v4469_v1  ;;  %vm899_vm1 = vcmask 261120   ;;  %s5467_s21 = sld [smem:[#allocation42_spill]]  ;;  %vm1114_vm2 = vcmask 64512   ;;  %s4470_s11 = smov 112  }
 0x1ab   : > { %3729 = vmatprep.subr.bf16.mxu0 %v4467_v0  ;;  %3549 = vmatprep.mubr.msk.f32.mxu0 %vm4468_vm0, %v4469_v1  ;;  %s4471_s0 = smov 120   ;;  %s4472_s24 = smov 104   ;;  %v878_v35 = vshrl.u32 %v877_v34, 7  ;;  %v880_v36 = vand.u32 127, %v877_v34  ;;  %v4473_v37 = vmov -1000000.0  }
 0x1ac   : > { %s4474_s6 = smov 8   ;;  %s4475_s22 = smov 16   ;;  %vm1796_vm4 = vcmask 130048   ;;  %vm1798_vm5 = vcmask 195584   ;;  %vm3030_vm6 = vcmask 523264  }
 0x1ad   : > { %vm881_vm3 = vcmp.le.s32.totalorder %v880_v36, %v878_v35  ;;  %s5401_s7 = smov 24   ;;  %s5468_s28 = sld [smem:[#allocation46_spill]] }
 0x1ae   : > { %v882_v38 = vsel %vm881_vm3, 0.0, %v4473_v37  ;;  %s5471_s17 = sld [smem:[#allocation51_spill]]  ;;  %s5472_s26 = sld [smem:[#allocation52_spill]] }
 0x1af   : > { %v883_v2 = vld [vmem:[%s5465_s8] sm:$0xff]  ;;  %v884_v3 = vld [vmem:[%s5465_s8 + $0x8] sm:$0xff]  ;;  %v885_v4 = vld [vmem:[%s5465_s8 + $0x10] sm:$0xff]  ;;  %s3136_s4 = scalar_lea.sflag [#allocation4], %s4980_s15  ;;  %p5475_p11 = scmp.ne.s32.totalorder %s5434_s20, 0 }
 0x1b0   : > { %v3718_v5 = vpack.c.bf16 %v884_v3, %v883_v2  ;;  %v886_v6 = vld [vmem:[%s5465_s8 + $0x18] sm:$0xff]  ;;  %v887_v8 = vld [vmem:[%s5466_s1] sm:$0xff]  ;;  %v888_v9 = vld [vmem:[%s5466_s1 + $0x8] sm:$0xff] }
 0x1b1   : > { %v3721_v7 = vpack.c.bf16 %v886_v6, %v885_v4  ;;  %v3724_v11 = vpack.c.bf16 %v888_v9, %v887_v8  ;;  %v889_v12 = vld [vmem:[%s5466_s1 + $0x10] sm:$0xff]  ;;  %v890_v13 = vld [vmem:[%s5466_s1 + $0x18] sm:$0xff]  ;;  %v891_v15 = vld [vmem:[%s5467_s21] sm:$0xff] }
 0x1b2   : > { %3719 = vmatpush3.bf16.msra.mxu1 %v3718_v5  ;;  %v3727_v14 = vpack.c.bf16 %v890_v13, %v889_v12  ;;  %v892_v16 = vld [vmem:[%s5467_s21 + $0x8] sm:$0xff]  ;;  %v893_v17 = vld [vmem:[%s5467_s21 + $0x10] sm:$0xff]  ;;  %v894_v19 = vld [vmem:[%s5467_s21 + $0x18] sm:$0xff] }
 0x1b3   : > { %3720 = vmatprep.subr.bf16.mxu1 %v4467_v0  ;;  %v3730_v18 = vpack.c.bf16 %v892_v16, %v891_v15  ;;  %v3733_v20 = vpack.c.bf16 %v894_v19, %v893_v17 }
 0x1b5   : > { %3731 = vmatpush3.bf16.msra.mxu0 %v3730_v18 }
 0x1b6   : > { %3722 = vmatpush3.bf16.msra.mxu1 %v3721_v7  ;;  %3732 = vmatprep.subr.bf16.mxu0 %v4467_v0 }
 0x1b7   : > { %3723 = vmatprep.subr.bf16.mxu1 %v4467_v0 }
 0x1b9   : > { %3528 = vmatmul.mubr.msk.f32.vlgmr.msra.gmra.mrb[0].mxu1 %vm899_vm1, %v5045_v10  ;;  %3734 = vmatpush3.bf16.msra.mxu0 %v3733_v20 }
 0x1ba   : > { %3725 = vmatpush3.bf16.msra.mxu1 %v3724_v11  ;;  %3538 = vmatprep.mubr.msk.f32.mxu1 %vm4468_vm0, %v4469_v1 }
 0x1bb   : > { %3726 = vmatprep.subr.bf16.mxu1 %v4467_v0  ;;  %3562 = vmatprep.subr.mxu0 %v4469_v1 }
 0x1bc   : > { %3550 = vmatmul.mubr.msk.f32.vlgmr.msra.gmra.mrb[0].mxu0 %vm899_vm1, %v5045_v10 }
 0x1bd   : > { %3564 = vmatprep.mubr.msk.f32.mxu0 %vm4468_vm0, %v4469_v1 }
 0x1be   : > { %3728 = vmatpush3.bf16.msra.mxu1 %v3727_v14 }
 0x1bf   : > { %3552 = vmatprep.subr.mxu1 %v4469_v1 }
 0x1c1   : > { %3539 = vmatmul.mubr.msk.f32.vlgmr.msra.gmra.mrb[2].mxu1 %vm899_vm1, %v5045_v10 }
 0x1c2   : > { %3554 = vmatprep.mubr.msk.f32.mxu1 %vm4468_vm0, %v4469_v1 }
 0x28c   : > { %v969_v21 = vpop.f32.mrb[0].mxu1 }
 0x28d   : > { %v3529_v22 = vpop.f32.mrb[1].mxu1  ;;  %v973_v25 = vmul.f32 0.35355338, %v969_v21 }
 0x28f   : > { %v5093_v26 = vpop.f32.mrb[0].mxu0 }
 0x290   : > { %v3551_v27 = vpop.f32.mrb[1].mxu0 }
 0x294   : > { %v1040_v23 = vpop.f32.mrb[2].mxu1 }
 0x295   : > { %1449 = vrot.lane.b32.xlu1 %v1040_v23, %s4470_s11  ;;  %1280 = vrot.lane.b32.xlu0 %v1040_v23, %s4471_s0  ;;  %v3540_v24 = vpop.f32.mrb[3].mxu1 }
 0x296   : > { %3553 = vmatpush3.xpose.msk.msra.mxu1 %vm1114_vm2, %v1040_v23 }
 0x297   : > { %3557 = vmatprep.subr.mxu1 %v4469_v1 }
 0x299   : > { %3555 = vmatmul.mubr.msk.f32.vlgmr.msra.gmra.mrb[4].mxu1 %vm1114_vm2, %v973_v25  ;;  %1447 = vrot.lane.b32.xlu1 %v973_v25, %s4470_s11 }
 0x29a   : > { %1278 = vrot.lane.b32.xlu0 %v973_v25, %s4471_s0  ;;  %3559 = vmatprep.mubr.msk.f32.mxu1 %vm4468_vm0, %v4469_v1 }
 0x29b   : > { %3558 = vmatpush3.msra.mxu1 %v5093_v26 }
 0x29c   : > { %3567 = vmatprep.subr.mxu1 %v4469_v1 }
 0x29d   : > { %1615 = vrot.lane.b32.xlu1 %v973_v25, %s4472_s24 }
 0x29e   : > { %1617 = vrot.lane.b32.xlu0 %v1040_v23, %s4472_s24 }
 0x307   : > { %v1281_v28 = vpop.permute.xlu0 %1280  ;;  %v1450_v29 = vpop.permute.xlu1 %1449 }
 0x308   : > { %3563 = vmatpush3.xpose.msk.msra.mxu0 %vm1114_vm2, %v1281_v28 }
 0x309   : > { %3572 = vmatprep.subr.mxu0 %v4469_v1 }
 0x30b   : > { %v1448_v31 = vpop.permute.xlu1 %1447 }
 0x30c   : > { %v1279_v30 = vpop.permute.xlu0 %1278 }
 0x30d   : > { %3565 = vmatmul.mubr.msk.f32.vlgmr.msra.gmra.mrb[2].mxu0 %vm1114_vm2, %v1279_v30 }
 0x30e   : > { %3573 = vmatpush3.xpose.msk.msra.mxu0 %vm1114_vm2, %v1450_v29  ;;  %3574 = vmatprep.mubr.msk.f32.mxu0 %vm4468_vm0, %v4469_v1 }
 0x30f   : > { %3582 = vmatprep.subr.mxu0 %v4469_v1  ;;  %v1616_v33 = vpop.permute.xlu1 %1615 }
 0x310   : > { %v1618_v32 = vpop.permute.xlu0 %1617 }
 0x311   : > { %3575 = vmatmul.mubr.msk.f32.vlgmr.msra.gmra.mrb[4].mxu0 %vm1114_vm2, %v1448_v31 }
 0x312   : > { %3583 = vmatpush3.xpose.msk.msra.mxu0 %vm1114_vm2, %v1618_v32  ;;  %3584 = vmatprep.mubr.msk.f32.mxu0 %vm4468_vm0, %v4469_v1 }
 0x313   : > { %3735 = vmatprep.subr.bf16.mxu0 %v4467_v0 }
 0x315   : > { %3585 = vmatmul.mubr.msk.f32.vlgmr.msra.gmra.mrb[6].mxu0 %vm1114_vm2, %v1616_v33 }
 0x316   : > { %3600 = vmatprep.mubr.msk.f32.mxu0 %vm4468_vm0, %v4469_v1 }
 0x36c   : > { %v1187_v39 = vpop.f32.mrb[4].mxu1 }
 0x36d   : > { %v1188_v40 = vadd.f32 %v1187_v39, %v882_v38  ;;  %v3556_v41 = vpop.f32.mrb[5].mxu1 }
 0x36f   : > { %v1191_v42 = vsel %vm1114_vm2, %v1188_v40, -inf }
 0x370   : > { %1192 = vmax.xlane.f32.xlu0 %v1191_v42 }
 0x3e0   : > { %v1352_v43 = vpop.f32.mrb[2].mxu0 }
 0x3e1   : > { %v1353_v44 = vadd.f32 %v1352_v43, %v882_v38  ;;  %v3566_v45 = vpop.f32.mrb[3].mxu0  ;;  %v895_v43 = vld [vmem:[#allocation8] sm:$0xff] }
 0x3e3   : > { %v1356_v46 = vsel %vm1114_vm2, %v1353_v44, -inf }
 0x3e4   : > { %1357 = vmax.xlane.f32.xlu1 %v1356_v46  ;;  %v1521_v47 = vpop.f32.mrb[4].mxu0  ;;  %v897_v46 = vld [vmem:[#allocation8 + $0x10] sm:$0xff] }
 0x3e5   : > { %v1522_v48 = vadd.f32 %v1521_v47, %v882_v38  ;;  %v3576_v49 = vpop.f32.mrb[5].mxu0  ;;  %v898_v47 = vld [vmem:[#allocation8 + $0x18] sm:$0xff] }
 0x3e7   : > { %v1525_v50 = vsel %vm1114_vm2, %v1522_v48, -inf }
 0x3e8   : > { %v1689_v51 = vpop.f32.mrb[6].mxu0  ;;  %1526 = vmax.xlane.f32.xlu0 %v1525_v50 }
 0x3e9   : > { %v1690_v52 = vadd.f32 %v1689_v51, %v882_v38  ;;  %v3586_v53 = vpop.f32.mrb[7].mxu0 }
 0x3eb   : > { %v1693_v54 = vsel %vm1114_vm2, %v1690_v52, -inf }
 0x3ec   : > { %1694 = vmax.xlane.f32.xlu0 %v1693_v54 }
 0x3fd   : > { %v1193_v55 = vpop.xlane.xlu0 %1192 }
 0x3fe   : > { %v1194_v56 = vsub.f32 %v1188_v40, %v1193_v55 }
 0x400   : > { %v1195_v57 = vmul.f32 1.442695, %v1194_v56 }
 0x402   : > { %3952 = vpow2.f32 %v1195_v57 }
 0x40c   : > { %v3953_v58 = vpop.eup %3952 }
 0x40d   : > { %v1197_v59 = vsel %vm1114_vm2, %v3953_v58, 0.0 }
 0x40e   : > { %1198 = vadd.xlane.f32.xlu1 %v1197_v59 }
 0x41f   : > { %1371 = vrot.lane.b32.xlu1 %v5093_v26, %s4471_s0 }
 0x471   : > { %v1358_v60 = vpop.xlane.xlu1 %1357 }
 0x472   : > { %v1359_v61 = vsub.f32 %v1353_v44, %v1358_v60  ;;  %v896_v44 = vld [vmem:[#allocation8 + $0x8] sm:$0xff] }
 0x473   : > { %v3736_v45 = vpack.c.bf16 %v896_v44, %v895_v43 }
 0x474   : > { %v1360_v62 = vmul.f32 1.442695, %v1359_v61 }
 0x475   : > { %v1527_v63 = vpop.xlane.xlu0 %1526  ;;  %3737 = vmatpush3.bf16.msra.mxu0 %v3736_v45 }
 0x476   : > { %3954 = vpow2.f32 %v1360_v62  ;;  %v1528_v2 = vsub.f32 %v1522_v48, %v1527_v63  ;;  %3738 = vmatprep.subr.bf16.mxu0 %v4467_v0  ;;  %v3739_v48 = vpack.c.bf16 %v898_v47, %v897_v46  ;;  %v3407_v47 = vld [vmem:[%s767_s23] ss:$0 sm:$0xff]  ;;  %s5469_s23 = smov 24  }
 0x478   : > { %v1529_v3 = vmul.f32 1.442695, %v1528_v2 }
 0x479   : > { %v1695_v4 = vpop.xlane.xlu0 %1694  ;;  %3740 = vmatpush3.bf16.msra.mxu0 %v3739_v48 }
 0x47a   : > { %3956 = vpow2.f32 %v1529_v3  ;;  %v1696_v5 = vsub.f32 %v1690_v52, %v1695_v4  ;;  %3747 = vmatprep.subr.bf16.mxu0 %v4467_v0 }
 0x47c   : > { %v1697_v6 = vmul.f32 1.442695, %v1696_v5 }
 0x47e   : > { %3958 = vpow2.f32 %v1697_v6 }
 0x480   : > { %v3955_v7 = vpop.eup %3954 }
 0x481   : > { %v1362_v8 = vsel %vm1114_vm2, %v3955_v7, 0.0 }
 0x482   : > { %1363 = vadd.xlane.f32.xlu0 %v1362_v8  ;;  %v1908_v8 = vld [vmem:[#allocation13] sm:$0xff] }
 0x484   : > { %v3957_v9 = vpop.eup %3956 }
 0x485   : > { %v1531_v11 = vsel %vm1114_vm2, %v3957_v9, 0.0 }
 0x486   : > { %1532 = vadd.xlane.f32.xlu1 %v1531_v11 }
 0x488   : > { %v3959_v12 = vpop.eup %3958 }
 0x489   : > { %v1699_v13 = vsel %vm1114_vm2, %v3959_v12, 0.0 }
 0x48a   : > { %1700 = vadd.xlane.f32.xlu0 %v1699_v13 }
 0x497   : > { %1707 = vrot.lane.b32.xlu1 %v5093_v26, %s4472_s24 }
 0x49b   : > { %v1199_v14 = vpop.xlane.xlu1 %1198 }
 0x49c   : > { %3960 = vrcp.f32 %v1199_v14 }
 0x49f   : > { %v1372_v20 = vpop.permute.xlu1 %1371 }
 0x4a0   : > { %1539 = vrot.lane.b32.xlu0 %v5093_v26, %s4470_s11 }
 0x4a6   : > { %v3961_v15 = vpop.eup %3960 }
 0x4a7   : > { %v1201_v16 = vmul.f32 %v3961_v15, %v1199_v14  ;;  %v876_v14 = vld [vmem:[%s759_s5] sm:$0xff]  ;;  %s5473_s5 = sld [smem:[#allocation53_spill]] }
 0x4a9   : > { %v1202_v17 = vsub.f32 2.0, %v1201_v16  ;;  %v1905_v16 = vld [vmem:[%s5468_s28 + $0x8] sm:$0xff] }
 0x4ab   : > { %v1203_v18 = vmul.f32 %v3961_v15, %v1202_v17  ;;  %v1904_v15 = vld [vmem:[%s5468_s28] sm:$0xff] }
 0x4ac   : > { %v3742_v17 = vpack.c.bf16 %v1905_v16, %v1904_v15 }
 0x4ad   : > { %v1204_v19 = vmul.f32 %v3953_v58, %v1203_v18  ;;  %v1906_v18 = vld [vmem:[%s5468_s28 + $0x10] sm:$0xff] }
 0x4af   : > { %3560 = vmatmul.mubr.msk.f32.vlgmr.msra.gmra.mrb[6].mxu1 %vm1114_vm2, %v1204_v19  ;;  %v1907_v19 = vld [vmem:[%s5468_s28 + $0x18] sm:$0xff] }
 0x4b0   : > { %3568 = vmatpush3.msra.mxu1 %v1372_v20  ;;  %3569 = vmatprep.mubr.msk.f32.mxu1 %vm4468_vm0, %v4469_v1  ;;  %v3745_v20 = vpack.c.bf16 %v1907_v19, %v1906_v18 }
 0x4b1   : > { %3577 = vmatprep.subr.mxu1 %v4469_v1 }
 0x50f   : > { %v1364_v21 = vpop.xlane.xlu0 %1363 }
 0x510   : > { %3962 = vrcp.f32 %v1364_v21 }
 0x513   : > { %v1533_v22 = vpop.xlane.xlu1 %1532 }
 0x514   : > { %3964 = vrcp.f32 %v1533_v22 }
 0x517   : > { %v1701_v23 = vpop.xlane.xlu0 %1700  ;;  %v1708_v38 = vpop.permute.xlu1 %1707 }
 0x518   : > { %3966 = vrcp.f32 %v1701_v23 }
 0x51a   : > { %v3963_v24 = vpop.eup %3962 }
 0x51b   : > { %v1366_v25 = vmul.f32 %v3963_v24, %v1364_v21  ;;  %v1540_v35 = vpop.permute.xlu0 %1539 }
 0x51d   : > { %v1367_v26 = vsub.f32 2.0, %v1366_v25  ;;  %v3402_v25 = vld [vmem:[#allocation10] ss:$0 sm:$0xff] }
 0x51e   : > { %v3965_v27 = vpop.eup %3964 }
 0x51f   : > { %v1368_v28 = vmul.f32 %v3963_v24, %v1367_v26  ;;  %v1535_v29 = vmul.f32 %v3965_v27, %v1533_v22 }
 0x521   : > { %v1369_v30 = vmul.f32 %v3955_v7, %v1368_v28  ;;  %v1536_v31 = vsub.f32 2.0, %v1535_v29 }
 0x522   : > { %v3967_v32 = vpop.eup %3966 }
 0x523   : > { %v1537_v33 = vmul.f32 %v3965_v27, %v1536_v31  ;;  %v1703_v34 = vmul.f32 %v3967_v32, %v1701_v23  ;;  %3570 = vmatmul.mubr.msk.f32.vlgmr.msra.gmra.mrb[8].mxu1 %vm1114_vm2, %v1369_v30  ;;  %v3403_v27 = vld [vmem:[#allocation11] ss:$0 sm:$0xff] }
 0x524   : > { %3578 = vmatpush3.msra.mxu1 %v1540_v35  ;;  %3579 = vmatprep.mubr.msk.f32.mxu1 %vm4468_vm0, %v4469_v1 }
 0x525   : > { %v1538_v36 = vmul.f32 %v3957_v9, %v1537_v33  ;;  %v1704_v37 = vsub.f32 2.0, %v1703_v34  ;;  %3587 = vmatprep.subr.mxu1 %v4469_v1  ;;  %v1909_v9 = vld [vmem:[#allocation13 + $0x8] sm:$0xff] }
 0x526   : > { %v3748_v11 = vpack.c.bf16 %v1909_v9, %v1908_v8 }
 0x527   : > { %v1705_v39 = vmul.f32 %v3967_v32, %v1704_v37  ;;  %3580 = vmatmul.mubr.msk.f32.vlgmr.msra.gmra.mrb[10].mxu1 %vm1114_vm2, %v1538_v36  ;;  %v1912_v36 = vld [vmem:[#allocation14] sm:$0xff]  ;;  %v1913_v37 = vld [vmem:[#allocation14 + $0x8] sm:$0xff] }
 0x528   : > { %3588 = vmatpush3.msra.mxu1 %v1708_v38  ;;  %3589 = vmatprep.mubr.msk.f32.mxu1 %vm4468_vm0, %v4469_v1  ;;  %v1914_v38 = vld [vmem:[#allocation14 + $0x10] sm:$0xff] }
 0x529   : > { %v1706_v40 = vmul.f32 %v3959_v12, %v1705_v39  ;;  %3741 = vmatprep.subr.bf16.mxu1 %v4467_v0  ;;  %v1910_v12 = vld [vmem:[#allocation13 + $0x10] sm:$0xff]  ;;  %v3754_v39 = vpack.c.bf16 %v1913_v37, %v1912_v36 }
 0x52b   : > { %3590 = vmatmul.mubr.msk.f32.vlgmr.msra.gmra.mrb[12].mxu1 %vm1114_vm2, %v1706_v40  ;;  %v1915_v40 = vld [vmem:[#allocation14 + $0x18] sm:$0xff] }
 0x52c   : > { %3611 = vmatprep.mubr.msk.f32.mxu1 %vm4468_vm0, %v4469_v1  ;;  %3743 = vmatpush3.bf16.msra.mxu1 %v3742_v17 }
 0x52d   : > { %3744 = vmatprep.subr.bf16.mxu1 %v4467_v0 }
 0x530   : > { %3746 = vmatpush3.bf16.msra.mxu1 %v3745_v20 }
 0x531   : > { %3753 = vmatprep.subr.bf16.mxu1 %v4467_v0 }
 0x582   : > { %v1274_v41 = vpop.f32.mrb[6].mxu1 }
 0x583   : > { %v3561_v42 = vpop.f32.mrb[7].mxu1 }
 0x5f6   : > { %v1443_v49 = vpop.f32.mrb[8].mxu1 }
 0x5f7   : > { %1784 = vrot.lane.b32.xlu1 %v1443_v49, %s4474_s6  ;;  %v3571_v50 = vpop.f32.mrb[9].mxu1 }
 0x5fa   : > { %v1611_v51 = vpop.f32.mrb[10].mxu1 }
 0x5fb   : > { %1788 = vrot.lane.b32.xlu0 %v1611_v51, %s4475_s22  ;;  %v3581_v52 = vpop.f32.mrb[11].mxu1 }
 0x5fe   : > { %v1779_v53 = vpop.f32.mrb[12].mxu1 }
 0x5ff   : > { %1792 = vrot.lane.b32.xlu1 %v1779_v53, %s5401_s7  ;;  %v3591_v54 = vpop.f32.mrb[13].mxu1  ;;  %s5474_s7 = sld [smem:[#allocation54_spill]] }
 0x669   : > { %v1785_v55 = vpop.permute.xlu1 %1784 }
 0x66a   : > { %v1795_v57 = vsel %vm1114_vm2, %v1274_v41, %v1785_v55  ;;  %v3757_v41 = vpack.c.bf16 %v1915_v40, %v1914_v38 }
 0x66d   : > { %v1789_v56 = vpop.permute.xlu0 %1788 }
 0x66e   : > { %v1797_v58 = vsel %vm1796_vm4, %v1795_v57, %v1789_v56 }
 0x671   : > { %v1793_v59 = vpop.permute.xlu1 %1792 }
 0x672   : > { %v1799_v60 = vsel %vm1798_vm5, %v1797_v58, %v1793_v59 }
 0x673   : > { %3601 = vmatmul.mubr.msk.f32.vlgmr.msra.gmra.mrb[8].mxu0 %vm899_vm1, %v1799_v60 }
 0x674   : > { %3622 = vmatprep.mubr.msk.f32.mxu0 %vm4468_vm0, %v4469_v1  ;;  %3749 = vmatpush3.bf16.msra.mxu0 %v3748_v11 }
 0x675   : > { %3750 = vmatprep.subr.bf16.mxu0 %v4467_v0 }
 0x746   : > { %v1869_v61 = vpop.f32.mrb[8].mxu0 }
 0x747   : > { %v1873_v62 = vadd.f32 %v1869_v61, %v5045_v10  ;;  %v3602_v63 = vpop.f32.mrb[9].mxu0  ;;  %v1911_v10 = vld [vmem:[#allocation13 + $0x18] sm:$0xff] }
 0x748   : > { %v3751_v13 = vpack.c.bf16 %v1911_v10, %v1910_v12 }
 0x749   : > { %v1876_v2 = vsel %vm899_vm1, %v1873_v62, 0.0 }
 0x74a   : > { %1877 = vadd.xlane.f32.xlu0 %v1876_v2  ;;  %3752 = vmatpush3.bf16.msra.mxu0 %v3751_v13 }
 0x74b   : > { %3636 = vmatprep.subr.mxu0 %v4469_v1 }
 0x74d   : > { %3623 = vmatmul.mubr.msk.f32.vlgmr.msra.gmra.mrb[10].mxu0 %vm899_vm1, %v876_v14 }
 0x74e   : > { %3638 = vmatprep.mubr.msk.f32.mxu0 %vm4468_vm0, %v4469_v1 }
 0x7d7   : > { %v1878_v3 = vpop.xlane.xlu0 %1877 }
 0x7d8   : > { %v1880_v4 = vmul.f32 0.03125, %v1878_v3 }
 0x7da   : > { %v1881_v5 = vsub.f32 %v1873_v62, %v1880_v4 }
 0x7dc   : > { %v1882_v6 = vmul.f32 %v1881_v5, %v1881_v5 }
 0x7de   : > { %v1883_v7 = vsel %vm899_vm1, %v1882_v6, 0.0 }
 0x7df   : > { %1884 = vadd.xlane.f32.xlu1 %v1883_v7 }
 0x820   : > { %v2064_v30 = vpop.f32.mrb[10].mxu0 }
 0x821   : > { %2309 = vrot.lane.b32.xlu0 %v2064_v30, %s4471_s0  ;;  %v3624_v31 = vpop.f32.mrb[11].mxu0  ;;  %3637 = vmatpush3.xpose.msk.msra.mxu0 %vm1114_vm2, %v2064_v30 }
 0x822   : > { %3646 = vmatprep.subr.mxu0 %v4469_v1 }
 0x825   : > { %2478 = vrot.lane.b32.xlu0 %v2064_v30, %s4470_s11 }
 0x829   : > { %2646 = vrot.lane.b32.xlu0 %v2064_v30, %s4472_s24 }
 0x86c   : > { %v1885_v21 = vpop.xlane.xlu1 %1884 }
 0x86d   : > { %v1886_v22 = vmul.f32 0.03125, %v1885_v21 }
 0x86f   : > { %v1887_v23 = vadd.f32 1e-05, %v1886_v22 }
 0x871   : > { %3968 = vrsqrt.f32 %v1887_v23 }
 0x87b   : > { %v3969_v24 = vpop.eup %3968 }
 0x87c   : > { %v1889_v26 = vmul.f32 %v3969_v24, %v1881_v5 }
 0x87e   : > { %v1896_v28 = vmul.f32 %v3402_v25, %v1889_v26 }
 0x880   : > { %v5176_v29 = vadd.f32 %v3403_v27, %v1896_v28 }
 0x882   : > { %3612 = vmatmul.mubr.msk.f32.vlgmr.msra.gmra.mrb[14].mxu1 %vm899_vm1, %v5176_v29 }
 0x883   : > { %3633 = vmatprep.mubr.msk.f32.mxu1 %vm4468_vm0, %v4469_v1  ;;  %3755 = vmatpush3.bf16.msra.mxu1 %v3754_v39 }
 0x884   : > { %3756 = vmatprep.subr.bf16.mxu1 %v4467_v0 }
 0x887   : > { %3758 = vmatpush3.bf16.msra.mxu1 %v3757_v41 }
 0x888   : > { %3641 = vmatprep.subr.mxu1 %v4469_v1 }
 0x88a   : > { %3634 = vmatmul.mubr.msk.f32.vlgmr.msra.gmra.mrb[16].mxu1 %vm899_vm1, %v876_v14 }
 0x88b   : > { %3643 = vmatprep.mubr.msk.f32.mxu1 %vm4468_vm0, %v4469_v1 }
 0x893   : > { %v2310_v35 = vpop.permute.xlu0 %2309 }
 0x897   : > { %v2479_v42 = vpop.permute.xlu0 %2478 }
 0x89b   : > { %v2647_v45 = vpop.permute.xlu0 %2646 }
 0x955   : > { %v1990_v32 = vpop.f32.mrb[14].mxu1 }
 0x956   : > { %v1994_v33 = vmul.f32 0.35355338, %v1990_v32  ;;  %v3613_v34 = vpop.f32.mrb[15].mxu1 }
 0x958   : > { %2307 = vrot.lane.b32.xlu1 %v1994_v33, %s4471_s0  ;;  %3639 = vmatmul.mubr.msk.f32.vlgmr.msra.gmra.mrb[12].mxu0 %vm1114_vm2, %v1994_v33 }
 0x959   : > { %3647 = vmatpush3.xpose.msk.msra.mxu0 %vm1114_vm2, %v2310_v35  ;;  %3648 = vmatprep.mubr.msk.f32.mxu0 %vm4468_vm0, %v4469_v1 }
 0x95a   : > { %3656 = vmatprep.subr.mxu0 %v4469_v1 }
 0x95c   : > { %2476 = vrot.lane.b32.xlu1 %v1994_v33, %s4470_s11 }
 0x95d   : > { %v2134_v52 = vpop.f32.mrb[16].mxu1 }
 0x95e   : > { %v3635_v53 = vpop.f32.mrb[17].mxu1  ;;  %3642 = vmatpush3.msra.mxu1 %v2134_v52 }
 0x95f   : > { %3651 = vmatprep.subr.mxu1 %v4469_v1 }
 0x960   : > { %2644 = vrot.lane.b32.xlu1 %v1994_v33, %s4472_s24 }
 0x9ca   : > { %v2308_v43 = vpop.permute.xlu1 %2307 }
 0x9cb   : > { %3649 = vmatmul.mubr.msk.f32.vlgmr.msra.gmra.mrb[14].mxu0 %vm1114_vm2, %v2308_v43 }
 0x9cc   : > { %3657 = vmatpush3.xpose.msk.msra.mxu0 %vm1114_vm2, %v2479_v42  ;;  %3658 = vmatprep.mubr.msk.f32.mxu0 %vm4468_vm0, %v4469_v1 }
 0x9cd   : > { %3666 = vmatprep.subr.mxu0 %v4469_v1 }
 0x9ce   : > { %v2477_v44 = vpop.permute.xlu1 %2476 }
 0x9cf   : > { %3659 = vmatmul.mubr.msk.f32.vlgmr.msra.gmra.mrb[16].mxu0 %vm1114_vm2, %v2477_v44 }
 0x9d0   : > { %3667 = vmatpush3.xpose.msk.msra.mxu0 %vm1114_vm2, %v2647_v45  ;;  %3668 = vmatprep.mubr.msk.f32.mxu0 %vm4468_vm0, %v4469_v1 }
 0x9d1   : > { %3759 = vmatprep.subr.bf16.mxu0 %v4467_v0 }
 0x9d2   : > { %v2645_v46 = vpop.permute.xlu1 %2644 }
 0x9d3   : > { %3669 = vmatmul.mubr.msk.f32.vlgmr.msra.gmra.mrb[18].mxu0 %vm1114_vm2, %v2645_v46 }
 0x9d4   : > { %3684 = vmatprep.mubr.msk.f32.mxu0 %vm4468_vm0, %v4469_v1 }
 0xa2b   : > { %v2216_v48 = vpop.f32.mrb[12].mxu0 }
 0xa2c   : > { %v2217_v49 = vadd.f32 %v3407_v47, %v2216_v48  ;;  %v3640_v50 = vpop.f32.mrb[13].mxu0 }
 0xa2e   : > { %v2220_v51 = vsel %vm1114_vm2, %v2217_v49, -inf }
 0xa2f   : > { %2221 = vmax.xlane.f32.xlu0 %v2220_v51 }
 0xa9e   : > { %v2381_v54 = vpop.f32.mrb[14].mxu0 }
 0xa9f   : > { %v2382_v55 = vadd.f32 %v3407_v47, %v2381_v54  ;;  %v3650_v56 = vpop.f32.mrb[15].mxu0  ;;  %v1916_v54 = vld [vmem:[#allocation16] sm:$0xff] }
 0xaa1   : > { %v2385_v57 = vsel %vm1114_vm2, %v2382_v55, -inf }
 0xaa2   : > { %2386 = vmax.xlane.f32.xlu1 %v2385_v57  ;;  %v2550_v58 = vpop.f32.mrb[16].mxu0  ;;  %v1918_v57 = vld [vmem:[#allocation16 + $0x10] sm:$0xff] }
 0xaa3   : > { %v2551_v59 = vadd.f32 %v3407_v47, %v2550_v58  ;;  %v3660_v60 = vpop.f32.mrb[17].mxu0  ;;  %v1919_v58 = vld [vmem:[#allocation16 + $0x18] sm:$0xff] }
 0xaa5   : > { %v2554_v61 = vsel %vm1114_vm2, %v2551_v59, -inf }
 0xaa6   : > { %2555 = vmax.xlane.f32.xlu0 %v2554_v61  ;;  %v2718_v62 = vpop.f32.mrb[18].mxu0 }
 0xaa7   : > { %v2719_v63 = vadd.f32 %v3407_v47, %v2718_v62  ;;  %v3670_v2 = vpop.f32.mrb[19].mxu0 }
 0xaa9   : > { %v2722_v3 = vsel %vm1114_vm2, %v2719_v63, -inf }
 0xaaa   : > { %2723 = vmax.xlane.f32.xlu0 %v2722_v3 }
 0xabc   : > { %v2222_v4 = vpop.xlane.xlu0 %2221 }
 0xabd   : > { %v2223_v5 = vsub.f32 %v2217_v49, %v2222_v4 }
 0xabf   : > { %v2224_v6 = vmul.f32 1.442695, %v2223_v5 }
 0xac1   : > { %3970 = vpow2.f32 %v2224_v6 }
 0xacb   : > { %v3971_v7 = vpop.eup %3970 }
 0xacc   : > { %v2226_v8 = vsel %vm1114_vm2, %v3971_v7, 0.0 }
 0xacd   : > { %2227 = vadd.xlane.f32.xlu1 %v2226_v8 }
 0xade   : > { %2400 = vrot.lane.b32.xlu1 %v2134_v52, %s4471_s0 }
 0xb2f   : > { %v2387_v9 = vpop.xlane.xlu1 %2386 }
 0xb30   : > { %v2388_v11 = vsub.f32 %v2382_v55, %v2387_v9  ;;  %v1917_v55 = vld [vmem:[#allocation16 + $0x8] sm:$0xff] }
 0xb31   : > { %v3760_v56 = vpack.c.bf16 %v1917_v55, %v1916_v54 }
 0xb32   : > { %v2389_v12 = vmul.f32 1.442695, %v2388_v11 }
 0xb33   : > { %v2556_v10 = vpop.xlane.xlu0 %2555  ;;  %3761 = vmatpush3.bf16.msra.mxu0 %v3760_v56 }
 0xb34   : > { %3972 = vpow2.f32 %v2389_v12  ;;  %v2557_v13 = vsub.f32 %v2551_v59, %v2556_v10  ;;  %3762 = vmatprep.subr.bf16.mxu0 %v4467_v0  ;;  %v3763_v59 = vpack.c.bf16 %v1919_v58, %v1918_v57 }
 0xb36   : > { %v2558_v14 = vmul.f32 1.442695, %v2557_v13 }
 0xb37   : > { %v2724_v15 = vpop.xlane.xlu0 %2723  ;;  %3764 = vmatpush3.bf16.msra.mxu0 %v3763_v59 }
 0xb38   : > { %3974 = vpow2.f32 %v2558_v14  ;;  %v2725_v16 = vsub.f32 %v2719_v63, %v2724_v15  ;;  %3771 = vmatprep.subr.bf16.mxu0 %v4467_v0 }
 0xb3a   : > { %v2726_v17 = vmul.f32 1.442695, %v2725_v16 }
 0xb3c   : > { %3976 = vpow2.f32 %v2726_v17 }
 0xb3e   : > { %v3973_v18 = vpop.eup %3972 }
 0xb3f   : > { %v2391_v19 = vsel %vm1114_vm2, %v3973_v18, 0.0 }
 0xb40   : > { %2392 = vadd.xlane.f32.xlu0 %v2391_v19  ;;  %v2930_v19 = vld [vmem:[#allocation20] sm:$0xff] }
 0xb42   : > { %v3975_v20 = vpop.eup %3974 }
 0xb43   : > { %v2560_v21 = vsel %vm1114_vm2, %v3975_v20, 0.0 }
 0xb44   : > { %2561 = vadd.xlane.f32.xlu1 %v2560_v21 }
 0xb46   : > { %v3977_v22 = vpop.eup %3976 }
 0xb47   : > { %v2728_v23 = vsel %vm1114_vm2, %v3977_v22, 0.0 }
 0xb48   : > { %2729 = vadd.xlane.f32.xlu0 %v2728_v23 }
 0xb55   : > { %2736 = vrot.lane.b32.xlu1 %v2134_v52, %s4472_s24  ;;  %s5470_s24 = sld [smem:[#allocation50_spill]] }
 0xb5a   : > { %v2228_v24 = vpop.xlane.xlu1 %2227 }
 0xb5b   : > { %3978 = vrcp.f32 %v2228_v24  ;;  %v3015_v23 = vld [vmem:[%s5470_s24] sm:$0xff] }
 0xb5e   : > { %2568 = vrot.lane.b32.xlu0 %v2134_v52, %s4470_s11  ;;  %v2401_v31 = vpop.permute.xlu1 %2400  ;;  %s874_s11 = scalar_lea.vmem [#allocation23], %s4983_s13 }
 0xb5f   : > { %s3149_s0 = sshll.u32 %s874_s11, 4  ;;  %s5303_s0 = int_to_ptr.vmem [resolvable:$true] %s3149_s0 }
 0xb60   : > { %s4360_s30 = scalar_lea.vmem %s5303_s0, 128 }
 0xb61   : > { %p4361_p10 = scmp.ne.s32.totalorder %s5303_s0, %s4360_s30 }
 0xb63   : > { %p4362_p2 = pnand %p4361_p10, %p5475_p11 }
 0xb65   : > { %v3979_v25 = vpop.eup %3978  ;;  %p4363_p1 = pneg %p4362_p2 }
 0xb66   : > { %v2230_v26 = vmul.f32 %v3979_v25, %v2228_v24  ;;  %v3016_v24 = vld [vmem:[%s5470_s24 + $0x8] sm:$0xff] }
 0xb68   : > { %v2231_v27 = vsub.f32 2.0, %v2230_v26  ;;  %v3772_v26 = vpack.c.bf16 %v3016_v24, %v3015_v23 }
 0xb6a   : > { %v2232_v28 = vmul.f32 %v3979_v25, %v2231_v27  ;;  %v3017_v25 = vld [vmem:[%s5470_s24 + $0x10] sm:$0xff]  ;;  %v3018_v27 = vld [vmem:[%s5470_s24 + $0x18] sm:$0xff] }
 0xb6c   : > { %v2233_v30 = vmul.f32 %v3971_v7, %v2232_v28  ;;  %v3775_v28 = vpack.c.bf16 %v3018_v27, %v3017_v25 }
 0xb6e   : > { %3644 = vmatmul.mubr.msk.f32.vlgmr.msra.gmra.mrb[18].mxu1 %vm1114_vm2, %v2233_v30  ;;  %v3019_v30 = vld [vmem:[%s5470_s24 + $0x20] sm:$0xff] }
 0xb6f   : > { %3652 = vmatpush3.msra.mxu1 %v2401_v31  ;;  %3653 = vmatprep.mubr.msk.f32.mxu1 %vm4468_vm0, %v4469_v1  ;;  %v3020_v31 = vld [vmem:[%s5470_s24 + $0x28] sm:$0xff] }
 0xb70   : > { %3661 = vmatprep.subr.mxu1 %v4469_v1 }
 0xbcd   : > { %v2393_v32 = vpop.xlane.xlu0 %2392 }
 0xbce   : > { %3980 = vrcp.f32 %v2393_v32 }
 0xbd1   : > { %v2562_v33 = vpop.xlane.xlu1 %2561 }
 0xbd2   : > { %3982 = vrcp.f32 %v2562_v33 }
 0xbd5   : > { %v2730_v34 = vpop.xlane.xlu0 %2729  ;;  %v2737_v50 = vpop.permute.xlu1 %2736 }
 0xbd6   : > { %3984 = vrcp.f32 %v2730_v34 }
 0xbd8   : > { %v3981_v35 = vpop.eup %3980 }
 0xbd9   : > { %v2395_v36 = vmul.f32 %v3981_v35, %v2393_v32  ;;  %v2569_v46 = vpop.permute.xlu0 %2568  ;;  %v3778_v32 = vpack.c.bf16 %v3020_v31, %v3019_v30 }
 0xbdb   : > { %v2396_v37 = vsub.f32 2.0, %v2395_v36 }
 0xbdc   : > { %v3983_v38 = vpop.eup %3982 }
 0xbdd   : > { %v2397_v39 = vmul.f32 %v3981_v35, %v2396_v37  ;;  %v2564_v40 = vmul.f32 %v3983_v38, %v2562_v33  ;;  %v3421_v37 = vld [vmem:[#allocation17] ss:$0 sm:$0xff] }
 0xbdf   : > { %v2398_v41 = vmul.f32 %v3973_v18, %v2397_v39  ;;  %v2565_v42 = vsub.f32 2.0, %v2564_v40  ;;  %v3422_v39 = vld [vmem:[#allocation19] ss:$0 sm:$0xff] }
 0xbe0   : > { %v3985_v43 = vpop.eup %3984 }
 0xbe1   : > { %v2566_v44 = vmul.f32 %v3983_v38, %v2565_v42  ;;  %v2732_v45 = vmul.f32 %v3985_v43, %v2730_v34  ;;  %3654 = vmatmul.mubr.msk.f32.vlgmr.msra.gmra.mrb[20].mxu1 %vm1114_vm2, %v2398_v41  ;;  %v3021_v42 = vld [vmem:[%s5470_s24 + $0x30] sm:$0xff] }
 0xbe2   : > { %3662 = vmatpush3.msra.mxu1 %v2569_v46  ;;  %3663 = vmatprep.mubr.msk.f32.mxu1 %vm4468_vm0, %v4469_v1 }
 0xbe3   : > { %v2567_v47 = vmul.f32 %v3975_v20, %v2566_v44  ;;  %v2733_v48 = vsub.f32 2.0, %v2732_v45  ;;  %3671 = vmatprep.subr.mxu1 %v4469_v1  ;;  %v2931_v20 = vld [vmem:[#allocation20 + $0x8] sm:$0xff]  ;;  %v3423_v44 = vld [vmem:[#allocation22] ss:$0 sm:$0xff] }
 0xbe4   : > { %v3766_v21 = vpack.c.bf16 %v2931_v20, %v2930_v19 }
 0xbe5   : > { %v2734_v49 = vmul.f32 %v3985_v43, %v2733_v48  ;;  %3664 = vmatmul.mubr.msk.f32.vlgmr.msra.gmra.mrb[22].mxu1 %vm1114_vm2, %v2567_v47 }
 0xbe6   : > { %3672 = vmatpush3.msra.mxu1 %v2737_v50  ;;  %3673 = vmatprep.mubr.msk.f32.mxu1 %vm4468_vm0, %v4469_v1 }
 0xbe7   : > { %v2735_v51 = vmul.f32 %v3977_v22, %v2734_v49  ;;  %3765 = vmatprep.subr.bf16.mxu1 %v4467_v0  ;;  %v2933_v22 = vld [vmem:[#allocation20 + $0x18] sm:$0xff]  ;;  %v3425_v49 = vld [vmem:[%s5471_s17] ss:$0 sm:$0xff] }
 0xbe9   : > { %3674 = vmatmul.mubr.msk.f32.vlgmr.msra.gmra.mrb[24].mxu1 %vm1114_vm2, %v2735_v51 }
 0xbea   : > { %3695 = vmatprep.mubr.msk.f32.mxu1 %vm4468_vm0, %v4469_v1  ;;  %3767 = vmatpush3.bf16.msra.mxu1 %v3766_v21 }
 0xbeb   : > { %3768 = vmatprep.subr.bf16.mxu1 %v4467_v0 }
 0xc41   : > { %v2303_v52 = vpop.f32.mrb[18].mxu1 }
 0xc42   : > { %v3645_v53 = vpop.f32.mrb[19].mxu1 }
 0xcb4   : > { %v2472_v60 = vpop.f32.mrb[20].mxu1 }
 0xcb5   : > { %2813 = vrot.lane.b32.xlu1 %v2472_v60, %s4474_s6  ;;  %v3655_v61 = vpop.f32.mrb[21].mxu1 }
 0xcb8   : > { %v2640_v62 = vpop.f32.mrb[22].mxu1 }
 0xcb9   : > { %2817 = vrot.lane.b32.xlu0 %v2640_v62, %s4475_s22  ;;  %v3665_v63 = vpop.f32.mrb[23].mxu1 }
 0xcbc   : > { %v2808_v2 = vpop.f32.mrb[24].mxu1 }
 0xcbd   : > { %2821 = vrot.lane.b32.xlu1 %v2808_v2, %s5469_s23  ;;  %v3675_v3 = vpop.f32.mrb[25].mxu1  ;;  %v3427_v2 = vld [vmem:[%s5472_s26] ss:$0 sm:$0xff]  ;;  %s3430_s23 = sshll.u32 %s4609_s29, 7  ;;  %s4477_s29 = smov [#allocation23]  }
 0xcbe   : > { %s5301_s17 = scalar_lea.hbm %s5474_s7, %s3430_s23  ;;  %s4364_s13 = sshll.u32 %s4477_s29, 4  ;;  %s4365_s13 = int_to_ptr.vmem [resolvable:$false] %s4364_s13 }
 0xcbf   : > { %s4366_s26 = scalar_lea.vmem %s4365_s13, 256  ;;  %p4367_p12 = scmp.lt.s32.totalorder %s5303_s0, %s4365_s13 }
 0xcc0   : > { %p4368_p13 = scmp.lt.s32.totalorder %s4366_s26, %s4360_s30 }
 0xcc2   : > { %p4369_p3 = por %p4368_p13, %p4367_p12 }
 0xcc4   : > { %p4370_p5 = pnand %p4369_p3, %p4363_p1 }
 0xd27   : > { %v2814_v4 = vpop.permute.xlu1 %2813 }
 0xd28   : > { %v2824_v6 = vsel %vm1114_vm2, %v2303_v52, %v2814_v4  ;;  %v3428_v4 = vld [vmem:[%s5473_s5] ss:$0 sm:$0xff] }
 0xd2b   : > { %v2818_v5 = vpop.permute.xlu0 %2817 }
 0xd2c   : > { %v2825_v7 = vsel %vm1796_vm4, %v2824_v6, %v2818_v5 }
 0xd2f   : > { %v2822_v8 = vpop.permute.xlu1 %2821 }
 0xd30   : > { %v2826_v9 = vsel %vm1798_vm5, %v2825_v7, %v2822_v8 }
 0xd31   : > { %3685 = vmatmul.mubr.msk.f32.vlgmr.msra.gmra.mrb[20].mxu0 %vm899_vm1, %v2826_v9 }
 0xd32   : > { %3714 = vmatprep.mubr.msk.f32.mxu0 %vm4468_vm0, %v4469_v1  ;;  %v2932_v1 = vld [vmem:[#allocation20 + $0x10] sm:$0xff]  ;;  %3773 = vmatpush3.bf16.msra.mxu0 %v3772_v26 }
 0xd33   : > { %3774 = vmatprep.subr.bf16.mxu0 %v4467_v0 }
 0xd36   : > { %3776 = vmatpush3.bf16.msra.mxu0 %v3775_v28 }
 0xd37   : > { %3777 = vmatprep.subr.bf16.mxu0 %v4467_v0 }
 0xd3a   : > { %3779 = vmatpush3.bf16.msra.mxu0 %v3778_v32 }
 0xd3b   : > { %3780 = vmatprep.subr.bf16.mxu0 %v4467_v0  ;;  %v3022_v0 = vld [vmem:[%s5470_s24 + $0x38] sm:$0xff] }
 0xd3c   : > { %v3781_v43 = vpack.c.bf16 %v3022_v0, %v3021_v42 }
 0xd3e   : > { %3782 = vmatpush3.bf16.msra.mxu0 %v3781_v43 }
 0xe04   : > { %v2896_v11 = vpop.f32.mrb[20].mxu0 }
 0xe05   : > { %v2900_v12 = vadd.f32 %v2896_v11, %v5176_v29  ;;  %v3686_v10 = vpop.f32.mrb[21].mxu0  ;;  %v3769_v29 = vpack.c.bf16 %v2933_v22, %v2932_v1 }
 0xe07   : > { %v2903_v13 = vsel %vm899_vm1, %v2900_v12, 0.0  ;;  %3770 = vmatpush3.bf16.msra.mxu1 %v3769_v29 }
 0xe08   : > { %2904 = vadd.xlane.f32.xlu0 %v2903_v13 }
 0xe95   : > { %v2905_v14 = vpop.xlane.xlu0 %2904 }
 0xe96   : > { %v2906_v15 = vmul.f32 0.03125, %v2905_v14 }
 0xe98   : > { %v2907_v16 = vsub.f32 %v2900_v12, %v2906_v15 }
 0xe9a   : > { %v2908_v17 = vmul.f32 %v2907_v16, %v2907_v16 }
 0xe9c   : > { %v2909_v18 = vsel %vm899_vm1, %v2908_v17, 0.0 }
 0xe9d   : > { %2910 = vadd.xlane.f32.xlu1 %v2909_v18 }
 0xf2a   : > { %v2911_v33 = vpop.xlane.xlu1 %2910 }
 0xf2b   : > { %v2912_v34 = vmul.f32 0.03125, %v2911_v33 }
 0xf2d   : > { %v2913_v35 = vadd.f32 1e-05, %v2912_v34 }
 0xf2f   : > { %3986 = vrsqrt.f32 %v2913_v35 }
 0xf39   : > { %v3987_v36 = vpop.eup %3986 }
 0xf3a   : > { %v2915_v38 = vmul.f32 %v3987_v36, %v2907_v16 }
 0xf3c   : > { %v2922_v40 = vmul.f32 %v3421_v37, %v2915_v38 }
 0xf3e   : > { %v2929_v41 = vadd.f32 %v3422_v39, %v2922_v40 }
 0xf40   : > { %3696 = vmatmul.mubr.msk.f32.vlgmr.msra.gmra.mrb[26].mxu1 %vm899_vm1, %v2929_v41 }
0x1013   : > { %v3010_v45 = vpop.f32.mrb[26].mxu1 }
0x1014   : > { %v3011_v46 = vadd.f32 %v3423_v44, %v3010_v45  ;;  %v3697_v47 = vpop.f32.mrb[27].mxu1 }
0x1016   : > { %v3014_v48 = vmax.f32 %v3011_v46, 0.0 }
0x1018   : > { %3715 = vmatmul.mubr.msk.f32.vlgmr.msra.gmra.mrb[22].mxu0 %vm3030_vm6, %v3014_v48 }
0x10eb   : > { %v3100_v50 = vpop.f32.mrb[22].mxu0 }
0x10ec   : > { %v3101_v51 = vadd.f32 %v3425_v49, %v3100_v50  ;;  %v3716_v52 = vpop.f32.mrb[23].mxu0 }
0x10ee   : > { %v3104_v53 = vadd.f32 %v3101_v51, %v2929_v41 }
0x10f0   : > { %v3107_v54 = vsel %vm899_vm1, %v3104_v53, 0.0 }
0x10f1   : > { %3108 = vadd.xlane.f32.xlu0 %v3107_v54 }
0x117e   : > { %v3109_v55 = vpop.xlane.xlu0 %3108 }
0x117f   : > { %v3110_v56 = vmul.f32 0.03125, %v3109_v55 }
0x1181   : > { %v3111_v57 = vsub.f32 %v3104_v53, %v3110_v56 }
0x1183   : > { %v3112_v58 = vmul.f32 %v3111_v57, %v3111_v57 }
0x1185   : > { %v3113_v59 = vsel %vm899_vm1, %v3112_v58, 0.0 }
0x1186   : > { %3114 = vadd.xlane.f32.xlu0 %v3113_v59 }
0x1213   : > { %v3115_v60 = vpop.xlane.xlu0 %3114 }
0x1214   : > { %v3116_v61 = vmul.f32 0.03125, %v3115_v60 }
0x1216   : > { %v3117_v62 = vadd.f32 1e-05, %v3116_v61 }
0x1218   : > { %3988 = vrsqrt.f32 %v3117_v62 }
0x1222   : > { %v3989_v63 = vpop.eup %3988 }
0x1223   : > { %v3119_v3 = vmul.f32 %v3989_v63, %v3111_v57 }
0x1225   : > { %v3126_v5 = vmul.f32 %v3427_v2, %v3119_v3 }
0x1227   : > { %v3133_v6 = vadd.f32 %v3428_v4, %v3126_v5 }
0x1229   : > { %3134 = vst.msk [vmem:[%s874_s11] sm:$0xff] %vm899_vm1, %v3133_v6 }
0x122a   : > { %4373 = shalt.err (!%p4370_p5)
}
0x122b   : > { %s4374_s15 = scalar_lea.hbm %s5301_s17, 128  ;;  %s4378_s5 = scalar_lea.hbm %s5474_s7, 256 }
0x122c   : > { %p4375_p7 = scmp.ne.s32.totalorder %s5301_s17, %s4374_s15  ;;  %p4379_p4 = scmp.lt.u32.totalorder %s5301_s17, %s5474_s7 }
0x122d   : > { %p4380_p6 = scmp.lt.u32.totalorder %s4378_s5, %s4374_s15  ;;  %p4382_p10 = scmp.lt.u32.totalorder %s4374_s15, %s5301_s17 }
0x122e   : > { %p4376_p8 = pnand %p4375_p7, %p5475_p11 }
0x122f   : > { %p4381_p0 = por %p4380_p6, %p4379_p4 }
0x1230   : > { %p4377_p9 = pneg %p4376_p8 }
0x1231   : > { %p4383_p2 = por %p4382_p10, %p4381_p0 }
0x1233   : > { %p4384_p1 = pnand %p4383_p2, %p4377_p9 }
0x1235   : > { %4387 = shalt.err (!%p4384_p1)
}
0x1236   : > { %3829 = dma.vmem_to_hbm [thread:$0]  (%p5475_p11), %s5303_s0, 128, %s5301_s17, %s3136_s4  }
0x1237 PF: > { %s5476_s6 = sld [smem:[#allocation36_spill]]  ;;  %s3161_s22 = sand.u32 1, %s4438_s2  }
0x1238   : > { %p5478_p13 = scmp.ge.s32.totalorder %s4450_s27, 2  ;;  %s3162_s30 = scalar_lea.sflag [#allocation4], %s3161_s22 }
0x123d   : > { %p5477_p12 = scmp.ne.s32.totalorder %s5476_s6, 0 }
0x123f   : > { %p3873_p3 = pnand %p5478_p13, %p5477_p12 }
0x1241   : > { %4433 = dma.done.wait (!%p3873_p3), %s3162_s30, 128  }
0x1242   : > { %4435 = vsyncadd (!%p3873_p3), %s3162_s30, 4294967168  ;;  %s5479_s27 = sld [smem:[#allocation34_spill]]  ;;  %s5480_s29 = sld [smem:[#allocation32_spill]] }
0x1243   : > { %s5481_s26 = sld [smem:[#allocation35_spill]]  ;;  %s5482_s2 = smov %s4442_s25 }
0x1248   : > { %p42_p5 = scmp.ge.s32.totalorder %s5479_s27, 4   ;;  %s5483_s25 = smov %s5480_s29 }
0x124a   :  { %44 = sbr.rel (!%p42_p5) target bundleno = 31 (0x1f), region = 213 }
0x1251   :  { %3167 = vsyncpa [#allocation3], 1 }
0x1252   :  { %3169 = vsyncpa [#allocation3 + $0x1], 1 }
0x1253   :  { %3170 = vsyncpa [#allocation6], 1 }
0x1254   :  { %3172 = vsyncpa [#allocation6 + $0x1], 1 }
0x1255   :  { %3173 = vsyncpa [#allocation9], 1 }
0x1256   :  { %3174 = vsyncpa [#allocation12], 1 }
0x1257   :  { %3175 = vsyncpa [#allocation15], 1 }
0x1258   :  { %3176 = vsyncpa [#allocation18], 1 }
0x1259   :  { %3177 = vsyncpa [#allocation21], 1 }
0x125a   :  { %3178 = vsyncpa [#allocation4], 1 }
0x125b   :  { %3180 = vsyncpa [#allocation4 + $0x1], 1 }

</bundles_post_ra>
